<compile_context>
chip_gen: v7x
topology: tpu7x:2x2x1
jax: 0.10.0
libtpu: 0.0.40
codegen_flags: <defaults>
</compile_context>

<pallas_src>
import jax
import jax.numpy as jnp
from jax.experimental import pallas as pl
from jax.experimental.pallas import tpu as pltpu

EPS = 1e-5
_VMEM_LIMIT = 48 * 1024 * 1024  # leaves headroom inside v7x's 64 MiB VMEM


# ----------------------------- kernel helpers -----------------------------

def _pad_im2col_conv(y3, w_ref, pad_ref, col_ref):
    """Zero-halo pad y3 (H,W,C) into pad_ref, build the (H*W, 9C) bf16 im2col
    buffer in col_ref, and return the f32 conv accumulator (H*W, C)."""
    H, W, C = y3.shape
    Hp, Wp = H + 2, W + 2
    pdt = pad_ref.dtype

    # Zero only the 1-wide halo frame.  Done every grid step so the kernel is
    # correct when the "parallel" grid axis is split across TensorCores
    # (each core has its own scratch); interior is fully overwritten below.
    pad_ref[0:1, :, :] = jnp.zeros((1, Wp, C), pdt)
    pad_ref[Hp - 1:Hp, :, :] = jnp.zeros((1, Wp, C), pdt)
    pad_ref[1:H + 1, 0:1, :] = jnp.zeros((H, 1, C), pdt)
    pad_ref[1:H + 1, Wp - 1:Wp, :] = jnp.zeros((H, 1, C), pdt)
    pad_ref[1:H + 1, 1:W + 1, :] = y3.astype(pdt)

    # im2col: fold the 3x3 taps into the contraction dim -> one K=9C matmul.
    for ky in range(3):
        for kx in range(3):
            t = ky * 3 + kx
            col_ref[:, t * C:(t + 1) * C] = (
                pad_ref[ky:ky + H, kx:kx + W, :]
                .reshape(H * W, C).astype(col_ref.dtype))

    # Single MXU matmul: (H*W, 9C) x (9C, C), bf16 operands, f32 accumulate.
    return jnp.dot(col_ref[...], w_ref[...], preferred_element_type=jnp.float32)


def _store_out_and_stats(acc, out_ref, stats_ref, H, W, C):
    out_ref[...] = acc.reshape(1, H, W, C)
    s = jnp.sum(acc, axis=0, keepdims=True)            # (1, C)
    ss = jnp.sum(acc * acc, axis=0, keepdims=True)     # (1, C)
    stats_ref[...] = jnp.concatenate([s, ss], axis=0).reshape(1, 2, C)


# -------------------------------- kernels ---------------------------------

def _conv1_kernel(x_ref, w_ref, out_ref, stats_ref, pad_ref, col_ref):
    # x_ref: (1,H,W,C) f32   w_ref: (9C,C) bf16
    _, H, W, C = x_ref.shape
    x3 = x_ref[...].reshape(H, W, C)
    acc = _pad_im2col_conv(x3, w_ref, pad_ref, col_ref)
    _store_out_and_stats(acc, out_ref, stats_ref, H, W, C)


def _bnrelu_conv2_kernel(a1_ref, s1_ref, b1_ref, w_ref, out_ref, stats_ref,
                         pad_ref, col_ref):
    # a1_ref: (1,H,W,C) raw conv1 output; s1/b1: (1,C) folded BN scale/bias.
    _, H, W, C = a1_ref.shape
    y1 = jnp.maximum(a1_ref[...].reshape(H, W, C) * s1_ref[...] + b1_ref[...],
                     0.0)
    acc = _pad_im2col_conv(y1, w_ref, pad_ref, col_ref)
    _store_out_and_stats(acc, out_ref, stats_ref, H, W, C)


def _bn2_add_relu_kernel(a2_ref, x_ref, s2_ref, b2_ref, out_ref):
    # out = relu(scale2 * conv2(x) + bias2 + identity)
    y = a2_ref[...] * s2_ref[...] + b2_ref[...] + x_ref[...]
    out_ref[...] = jnp.maximum(y, 0.0).astype(out_ref.dtype)


# -------------------------------- wrapper ----------------------------------

def _conv_pass(kernel, operands, in_specs, N, H, W, C):
    out_shape = (jax.ShapeDtypeStruct((N, H, W, C), jnp.float32),
                 jax.ShapeDtypeStruct((N, 2, C), jnp.float32))
    out_specs = (pl.BlockSpec((1, H, W, C), lambda n: (n, 0, 0, 0)),
                 pl.BlockSpec((1, 2, C), lambda n: (n, 0, 0)))
    return pl.pallas_call(
        kernel,
        grid=(N,),
        in_specs=in_specs,
        out_specs=out_specs,
        out_shape=out_shape,
        scratch_shapes=[
            pltpu.VMEM((H + 2, W + 2, C), jnp.float32),    # zero-halo pad buf
            pltpu.VMEM((H * W, 9 * C), jnp.bfloat16),       # im2col buffer
        ],
        compiler_params=pltpu.CompilerParams(
            dimension_semantics=("parallel",),
            vmem_limit_bytes=_VMEM_LIMIT),
    )(*operands)


def _bn_fold(stats, gamma, beta, count):
    """Reduce per-tile (sum, sum^2) partials into per-channel scale/bias so BN
    becomes a single fused multiply-add inside the next kernel."""
    s = jnp.sum(stats[:, 0, :], axis=0)
    ss = jnp.sum(stats[:, 1, :], axis=0)
    mean = s / count
    var = jnp.maximum(ss / count - mean * mean, 0.0)   # biased var (train mode)
    scale = gamma.reshape(-1) * jax.lax.rsqrt(var + EPS)
    bias = beta.reshape(-1) - mean * scale
    C = scale.shape[0]
    return (scale.reshape(1, C).astype(jnp.float32),
            bias.reshape(1, C).astype(jnp.float32))


def basic_block(x, w1, w2, g1, b1, g2, b2):
    """x: (N,H,W,C) f32 NHWC; w: (3,3,C,C) HWIO; g/b: (C,). Returns (N,H,W,C)."""
    N, H, W, C = x.shape
    count = float(N * H * W)

    # Fold the 3x3 taps into K: (3,3,C,C) -> (9C, C); bf16 MXU operands.
    w1m = w1.reshape(9 * C, C).astype(jnp.bfloat16)
    w2m = w2.reshape(9 * C, C).astype(jnp.bfloat16)

    tile_spec = pl.BlockSpec((1, H, W, C), lambda n: (n, 0, 0, 0))
    wmat_spec = pl.BlockSpec((9 * C, C), lambda n: (0, 0))   # resident weights
    chan_spec = pl.BlockSpec((1, C), lambda n: (0, 0))

    # Pass 1: conv1 + bn1 partial statistics.
    a1, st1 = _conv_pass(_conv1_kernel, (x, w1m),
                         [tile_spec, wmat_spec], N, H, W, C)
    s1, bb1 = _bn_fold(st1, g1, b1, count)

    # Pass 2: bn1 + relu + conv2 + bn2 partial statistics.
    a2, st2 = _conv_pass(_bnrelu_conv2_kernel, (a1, s1, bb1, w2m),
                         [tile_spec, chan_spec, chan_spec, wmat_spec],
                         N, H, W, C)
    s2, bb2 = _bn_fold(st2, g2, b2, count)

    # Pass 3: bn2 + residual add (unpadded x directly) + relu.
    return pl.pallas_call(
        _bn2_add_relu_kernel,
        grid=(N,),
        in_specs=[tile_spec, tile_spec, chan_spec, chan_spec],
        out_specs=tile_spec,
        out_shape=jax.ShapeDtypeStruct((N, H, W, C), jnp.float32),
        compiler_params=pltpu.CompilerParams(
            dimension_semantics=("parallel",),
            vmem_limit_bytes=_VMEM_LIMIT),
    )(a2, x, s2, bb2)


# ------------------------------- reference ---------------------------------

def _reference(x, w1, w2, g1, b1, g2, b2):
    """Plain-JAX f32 reference of the PyTorch forward (train-mode BN)."""
    def conv(x, w):
        return jax.lax.conv_general_dilated(
            x, w, window_strides=(1, 1), padding=((1, 1), (1, 1)),
            dimension_numbers=("NHWC", "HWIO", "NHWC"))

    def bn(y, g, b):
        m = jnp.mean(y, axis=(0, 1, 2), keepdims=True)
        v = jnp.mean((y - m) ** 2, axis=(0, 1, 2), keepdims=True)
        return (y - m) * jax.lax.rsqrt(v + EPS) * g.reshape(1, 1, 1, -1) \
            + b.reshape(1, 1, 1, -1)

    y = jax.nn.relu(bn(conv(x, w1), g1, b1))
    y = bn(conv(y, w2), g2, b2)
    return jax.nn.relu(y + x)


if __name__ == "__main__":
    # C=128 keeps the last dim lane-dense (128 lanes); shapes stay small.
    N, H, W, C = 2, 16, 16, 128
    key = jax.random.PRNGKey(0)
    k = jax.random.split(key, 7)

    x = jax.random.normal(k[0], (N, H, W, C), jnp.float32)
    w1 = jax.random.normal(k[1], (3, 3, C, C), jnp.float32) * 0.05
    w2 = jax.random.normal(k[2], (3, 3, C, C), jnp.float32) * 0.05
    g1 = 1.0 + 0.1 * jax.random.normal(k[3], (C,), jnp.float32)
    b1 = 0.1 * jax.random.normal(k[4], (C,), jnp.float32)
    g2 = 1.0 + 0.1 * jax.random.normal(k[5], (C,), jnp.float32)
    b2 = 0.1 * jax.random.normal(k[6], (C,), jnp.float32)

    out = jax.block_until_ready(basic_block(x, w1, w2, g1, b1, g2, b2))
    ref = _reference(x, w1, w2, g1, b1, g2, b2)

    assert out.shape == (N, H, W, C)
    # bf16 MXU operands (f32 accumulation) vs f32 reference -> loosened bound.
    max_err = float(jnp.max(jnp.abs(out - ref)))
    assert max_err < 1e-1, f"mismatch vs reference, max_err={max_err}"

    print("KERNEL_OK")
</pallas_src>

<mosaic_0001>
module attributes {stable_mosaic.version = 11 : i64} {
  func.func @_conv1_kernel(%arg0: i32, %arg1: memref<1x16x16x128xf32, #tpu.memory_space<vmem>>, %arg2: memref<1152x128xbf16, #tpu.memory_space<vmem>>, %arg3: memref<1x16x16x128xf32, #tpu.memory_space<vmem>>, %arg4: memref<1x2x128xf32, #tpu.memory_space<vmem>>, %arg5: memref<18x18x128xf32, #tpu.memory_space<vmem>>, %arg6: memref<256x1152xbf16, #tpu.memory_space<vmem>>) attributes {dimension_semantics = [#tpu.dimension_semantics<parallel>], iteration_bounds = array<i64: 2>, scalar_prefetch = 0 : i64, scratch_operands = 2 : i64, tpu.core_type = #tpu.core_type<tc>, window_params = [{transform_indices = @transform_0, window_bounds = array<i64: 1, 16, 16, 128>}, {pipeline_mode = #tpu.pipeline_mode<synchronous>, transform_indices = @transform_1, window_bounds = array<i64: 1152, 128>}, {transform_indices = @transform_2, window_bounds = array<i64: 1, 16, 16, 128>}, {transform_indices = @transform_3, window_bounds = array<i64: 1, 2, 128>}]} {
    %c0 = arith.constant 0 : index
    %c0_0 = arith.constant 0 : index
    %c0_1 = arith.constant 0 : index
    %c0_2 = arith.constant 0 : index
    %0 = vector.load %arg1[%c0, %c0_0, %c0_1, %c0_2] : memref<1x16x16x128xf32, #tpu.memory_space<vmem>>, vector<1x16x16x128xf32>
    %1 = vector.shape_cast %0 : vector<1x16x16x128xf32> to vector<16x16x128xf32>
    %cst = arith.constant 0.000000e+00 : f32
    %2 = vector.broadcast %cst : f32 to vector<1x18x128xf32>
    %c0_3 = arith.constant 0 : index
    %c0_4 = arith.constant 0 : index
    %c0_5 = arith.constant 0 : index
    %3 = vector.load %arg5[%c0_3, %c0_4, %c0_5] : memref<18x18x128xf32, #tpu.memory_space<vmem>>, vector<1x18x128xf32>
    tpu.vector_store %arg5[%c0_3, %c0_4, %c0_5], %2 {strides = array<i32>} : memref<18x18x128xf32, #tpu.memory_space<vmem>>, vector<1x18x128xf32>,
    %cst_6 = arith.constant 0.000000e+00 : f32
    %4 = vector.broadcast %cst_6 : f32 to vector<1x18x128xf32>
    %c17 = arith.constant 17 : index
    %c0_7 = arith.constant 0 : index
    %c0_8 = arith.constant 0 : index
    %5 = vector.load %arg5[%c17, %c0_7, %c0_8] : memref<18x18x128xf32, #tpu.memory_space<vmem>>, vector<1x18x128xf32>
    tpu.vector_store %arg5[%c17, %c0_7, %c0_8], %4 {strides = array<i32>} : memref<18x18x128xf32, #tpu.memory_space<vmem>>, vector<1x18x128xf32>,
    %cst_9 = arith.constant 0.000000e+00 : f32
    %6 = vector.broadcast %cst_9 : f32 to vector<16x1x128xf32>
    %c1 = arith.constant 1 : index
    %c0_10 = arith.constant 0 : index
    %c0_11 = arith.constant 0 : index
    %7 = vector.load %arg5[%c1, %c0_10, %c0_11] : memref<18x18x128xf32, #tpu.memory_space<vmem>>, vector<16x1x128xf32>
    tpu.vector_store %arg5[%c1, %c0_10, %c0_11], %6 {strides = array<i32>} : memref<18x18x128xf32, #tpu.memory_space<vmem>>, vector<16x1x128xf32>,
    %cst_12 = arith.constant 0.000000e+00 : f32
    %8 = vector.broadcast %cst_12 : f32 to vector<16x1x128xf32>
    %c1_13 = arith.constant 1 : index
    %c17_14 = arith.constant 17 : index
    %c0_15 = arith.constant 0 : index
    %9 = vector.load %arg5[%c1_13, %c17_14, %c0_15] : memref<18x18x128xf32, #tpu.memory_space<vmem>>, vector<16x1x128xf32>
    tpu.vector_store %arg5[%c1_13, %c17_14, %c0_15], %8 {strides = array<i32>} : memref<18x18x128xf32, #tpu.memory_space<vmem>>, vector<16x1x128xf32>,
    %c1_16 = arith.constant 1 : index
    %c1_17 = arith.constant 1 : index
    %c0_18 = arith.constant 0 : index
    %10 = vector.load %arg5[%c1_16, %c1_17, %c0_18] : memref<18x18x128xf32, #tpu.memory_space<vmem>>, vector<16x16x128xf32>
    tpu.vector_store %arg5[%c1_16, %c1_17, %c0_18], %1 {strides = array<i32>} : memref<18x18x128xf32, #tpu.memory_space<vmem>>, vector<16x16x128xf32>,
    %c0_19 = arith.constant 0 : index
    %c0_20 = arith.constant 0 : index
    %c0_21 = arith.constant 0 : index
    %11 = vector.load %arg5[%c0_19, %c0_20, %c0_21] : memref<18x18x128xf32, #tpu.memory_space<vmem>>, vector<16x16x128xf32>
    %12 = vector.shape_cast %11 : vector<16x16x128xf32> to vector<256x128xf32>
    %13 = arith.truncf %12 : vector<256x128xf32> to vector<256x128xbf16>
    %c0_22 = arith.constant 0 : index
    %c0_23 = arith.constant 0 : index
    %14 = vector.load %arg6[%c0_22, %c0_23] : memref<256x1152xbf16, #tpu.memory_space<vmem>>, vector<256x128xbf16>
    tpu.vector_store %arg6[%c0_22, %c0_23], %13 {strides = array<i32>} : memref<256x1152xbf16, #tpu.memory_space<vmem>>, vector<256x128xbf16>,
    %c0_24 = arith.constant 0 : index
    %c1_25 = arith.constant 1 : index
    %c0_26 = arith.constant 0 : index
    %15 = vector.load %arg5[%c0_24, %c1_25, %c0_26] : memref<18x18x128xf32, #tpu.memory_space<vmem>>, vector<16x16x128xf32>
    %16 = vector.shape_cast %15 : vector<16x16x128xf32> to vector<256x128xf32>
    %17 = arith.truncf %16 : vector<256x128xf32> to vector<256x128xbf16>
    %c0_27 = arith.constant 0 : index
    %c128 = arith.constant 128 : index
    %18 = vector.load %arg6[%c0_27, %c128] : memref<256x1152xbf16, #tpu.memory_space<vmem>>, vector<256x128xbf16>
    tpu.vector_store %arg6[%c0_27, %c128], %17 {strides = array<i32>} : memref<256x1152xbf16, #tpu.memory_space<vmem>>, vector<256x128xbf16>,
    %c0_28 = arith.constant 0 : index
    %c2 = arith.constant 2 : index
    %c0_29 = arith.constant 0 : index
    %19 = vector.load %arg5[%c0_28, %c2, %c0_29] : memref<18x18x128xf32, #tpu.memory_space<vmem>>, vector<16x16x128xf32>
    %20 = vector.shape_cast %19 : vector<16x16x128xf32> to vector<256x128xf32>
    %21 = arith.truncf %20 : vector<256x128xf32> to vector<256x128xbf16>
    %c0_30 = arith.constant 0 : index
    %c256 = arith.constant 256 : index
    %22 = vector.load %arg6[%c0_30, %c256] : memref<256x1152xbf16, #tpu.memory_space<vmem>>, vector<256x128xbf16>
    tpu.vector_store %arg6[%c0_30, %c256], %21 {strides = array<i32>} : memref<256x1152xbf16, #tpu.memory_space<vmem>>, vector<256x128xbf16>,
    %c1_31 = arith.constant 1 : index
    %c0_32 = arith.constant 0 : index
    %c0_33 = arith.constant 0 : index
    %23 = vector.load %arg5[%c1_31, %c0_32, %c0_33] : memref<18x18x128xf32, #tpu.memory_space<vmem>>, vector<16x16x128xf32>
    %24 = vector.shape_cast %23 : vector<16x16x128xf32> to vector<256x128xf32>
    %25 = arith.truncf %24 : vector<256x128xf32> to vector<256x128xbf16>
    %c0_34 = arith.constant 0 : index
    %c384 = arith.constant 384 : index
    %26 = vector.load %arg6[%c0_34, %c384] : memref<256x1152xbf16, #tpu.memory_space<vmem>>, vector<256x128xbf16>
    tpu.vector_store %arg6[%c0_34, %c384], %25 {strides = array<i32>} : memref<256x1152xbf16, #tpu.memory_space<vmem>>, vector<256x128xbf16>,
    %c1_35 = arith.constant 1 : index
    %c1_36 = arith.constant 1 : index
    %c0_37 = arith.constant 0 : index
    %27 = vector.load %arg5[%c1_35, %c1_36, %c0_37] : memref<18x18x128xf32, #tpu.memory_space<vmem>>, vector<16x16x128xf32>
    %28 = vector.shape_cast %27 : vector<16x16x128xf32> to vector<256x128xf32>
    %29 = arith.truncf %28 : vector<256x128xf32> to vector<256x128xbf16>
    %c0_38 = arith.constant 0 : index
    %c512 = arith.constant 512 : index
    %30 = vector.load %arg6[%c0_38, %c512] : memref<256x1152xbf16, #tpu.memory_space<vmem>>, vector<256x128xbf16>
    tpu.vector_store %arg6[%c0_38, %c512], %29 {strides = array<i32>} : memref<256x1152xbf16, #tpu.memory_space<vmem>>, vector<256x128xbf16>,
    %c1_39 = arith.constant 1 : index
    %c2_40 = arith.constant 2 : index
    %c0_41 = arith.constant 0 : index
    %31 = vector.load %arg5[%c1_39, %c2_40, %c0_41] : memref<18x18x128xf32, #tpu.memory_space<vmem>>, vector<16x16x128xf32>
    %32 = vector.shape_cast %31 : vector<16x16x128xf32> to vector<256x128xf32>
    %33 = arith.truncf %32 : vector<256x128xf32> to vector<256x128xbf16>
    %c0_42 = arith.constant 0 : index
    %c640 = arith.constant 640 : index
    %34 = vector.load %arg6[%c0_42, %c640] : memref<256x1152xbf16, #tpu.memory_space<vmem>>, vector<256x128xbf16>
    tpu.vector_store %arg6[%c0_42, %c640], %33 {strides = array<i32>} : memref<256x1152xbf16, #tpu.memory_space<vmem>>, vector<256x128xbf16>,
    %c2_43 = arith.constant 2 : index
    %c0_44 = arith.constant 0 : index
    %c0_45 = arith.constant 0 : index
    %35 = vector.load %arg5[%c2_43, %c0_44, %c0_45] : memref<18x18x128xf32, #tpu.memory_space<vmem>>, vector<16x16x128xf32>
    %36 = vector.shape_cast %35 : vector<16x16x128xf32> to vector<256x128xf32>
    %37 = arith.truncf %36 : vector<256x128xf32> to vector<256x128xbf16>
    %c0_46 = arith.constant 0 : index
    %c768 = arith.constant 768 : index
    %38 = vector.load %arg6[%c0_46, %c768] : memref<256x1152xbf16, #tpu.memory_space<vmem>>, vector<256x128xbf16>
    tpu.vector_store %arg6[%c0_46, %c768], %37 {strides = array<i32>} : memref<256x1152xbf16, #tpu.memory_space<vmem>>, vector<256x128xbf16>,
    %c2_47 = arith.constant 2 : index
    %c1_48 = arith.constant 1 : index
    %c0_49 = arith.constant 0 : index
    %39 = vector.load %arg5[%c2_47, %c1_48, %c0_49] : memref<18x18x128xf32, #tpu.memory_space<vmem>>, vector<16x16x128xf32>
    %40 = vector.shape_cast %39 : vector<16x16x128xf32> to vector<256x128xf32>
    %41 = arith.truncf %40 : vector<256x128xf32> to vector<256x128xbf16>
    %c0_50 = arith.constant 0 : index
    %c896 = arith.constant 896 : index
    %42 = vector.load %arg6[%c0_50, %c896] : memref<256x1152xbf16, #tpu.memory_space<vmem>>, vector<256x128xbf16>
    tpu.vector_store %arg6[%c0_50, %c896], %41 {strides = array<i32>} : memref<256x1152xbf16, #tpu.memory_space<vmem>>, vector<256x128xbf16>,
    %c2_51 = arith.constant 2 : index
    %c2_52 = arith.constant 2 : index
    %c0_53 = arith.constant 0 : index
    %43 = vector.load %arg5[%c2_51, %c2_52, %c0_53] : memref<18x18x128xf32, #tpu.memory_space<vmem>>, vector<16x16x128xf32>
    %44 = vector.shape_cast %43 : vector<16x16x128xf32> to vector<256x128xf32>
    %45 = arith.truncf %44 : vector<256x128xf32> to vector<256x128xbf16>
    %c0_54 = arith.constant 0 : index
    %c1024 = arith.constant 1024 : index
    %46 = vector.load %arg6[%c0_54, %c1024] : memref<256x1152xbf16, #tpu.memory_space<vmem>>, vector<256x128xbf16>
    tpu.vector_store %arg6[%c0_54, %c1024], %45 {strides = array<i32>} : memref<256x1152xbf16, #tpu.memory_space<vmem>>, vector<256x128xbf16>,
    %c0_55 = arith.constant 0 : index
    %c0_56 = arith.constant 0 : index
    %47 = vector.load %arg6[%c0_55, %c0_56] : memref<256x1152xbf16, #tpu.memory_space<vmem>>, vector<256x1152xbf16>
    %c0_57 = arith.constant 0 : index
    %c0_58 = arith.constant 0 : index
    %48 = vector.load %arg2[%c0_57, %c0_58] : memref<1152x128xbf16, #tpu.memory_space<vmem>>, vector<1152x128xbf16>
    %cst_59 = arith.constant dense<0.000000e+00> : vector<256x128xf32>
    %49 = tpu.matmul %47, %48, %cst_59 {dimension_numbers = #tpu.dot_dimension_numbers<[1], [0], [0], [1], [0, 0, 1, 1], [], []>} : vector<256x1152xbf16>, vector<1152x128xbf16>, vector<256x128xf32> -> vector<256x128xf32>
    %50 = vector.shape_cast %49 : vector<256x128xf32> to vector<1x16x16x128xf32>
    %c0_60 = arith.constant 0 : index
    %c0_61 = arith.constant 0 : index
    %c0_62 = arith.constant 0 : index
    %c0_63 = arith.constant 0 : index
    %51 = vector.load %arg3[%c0_60, %c0_61, %c0_62, %c0_63] : memref<1x16x16x128xf32, #tpu.memory_space<vmem>>, vector<1x16x16x128xf32>
    tpu.vector_store %arg3[%c0_60, %c0_61, %c0_62, %c0_63], %50 {strides = array<i32>} : memref<1x16x16x128xf32, #tpu.memory_space<vmem>>, vector<1x16x16x128xf32>,
    %cst_64 = arith.constant dense<0.000000e+00> : vector<128xf32>
    %52 = vector.multi_reduction <add>, %49, %cst_64 [0] : vector<256x128xf32> to vector<128xf32>
    %53 = vector.shape_cast %52 : vector<128xf32> to vector<1x128xf32>
    %54 = arith.mulf %49, %49 : vector<256x128xf32>
    %cst_65 = arith.constant dense<0.000000e+00> : vector<128xf32>
    %55 = vector.multi_reduction <add>, %54, %cst_65 [0] : vector<256x128xf32> to vector<128xf32>
    %56 = vector.shape_cast %55 : vector<128xf32> to vector<1x128xf32>
    %57 = tpu.concatenate %53, %56 in 0 : vector<1x128xf32>, vector<1x128xf32> -> vector<2x128xf32>
    %58 = vector.shape_cast %57 : vector<2x128xf32> to vector<1x2x128xf32>
    %c0_66 = arith.constant 0 : index
    %c0_67 = arith.constant 0 : index
    %c0_68 = arith.constant 0 : index
    %59 = vector.load %arg4[%c0_66, %c0_67, %c0_68] : memref<1x2x128xf32, #tpu.memory_space<vmem>>, vector<1x2x128xf32>
    tpu.vector_store %arg4[%c0_66, %c0_67, %c0_68], %58 {strides = array<i32>} : memref<1x2x128xf32, #tpu.memory_space<vmem>>, vector<1x2x128xf32>,
    return
  }
  func.func @transform_0(%arg0: i32) -> (i32, i32, i32, i32) {
    %c0_i32 = arith.constant 0 : i32
    %c0_i32_0 = arith.constant 0 : i32
    %c0_i32_1 = arith.constant 0 : i32
    %c0_i32_2 = arith.constant 0 : i32
    return %arg0, %c0_i32, %c0_i32_0, %c0_i32_1 : i32, i32, i32, i32
  }
  func.func @transform_1(%arg0: i32) -> (i32, i32) {
    %c0_i32 = arith.constant 0 : i32
    %c0_i32_0 = arith.constant 0 : i32
    %c0_i32_1 = arith.constant 0 : i32
    return %c0_i32, %c0_i32_0 : i32, i32
  }
  func.func @transform_2(%arg0: i32) -> (i32, i32, i32, i32) {
    %c0_i32 = arith.constant 0 : i32
    %c0_i32_0 = arith.constant 0 : i32
    %c0_i32_1 = arith.constant 0 : i32
    %c0_i32_2 = arith.constant 0 : i32
    return %arg0, %c0_i32, %c0_i32_0, %c0_i32_1 : i32, i32, i32, i32
  }
  func.func @transform_3(%arg0: i32) -> (i32, i32, i32) {
    %c0_i32 = arith.constant 0 : i32
    %c0_i32_0 = arith.constant 0 : i32
    %c0_i32_1 = arith.constant 0 : i32
    return %arg0, %c0_i32, %c0_i32_0 : i32, i32, i32
  }
}

</mosaic_0001>

<bundles_post_ra>
// kernel: tpu_custom_call.1
= control target key start
LH: loop header
LB: loop body
LE: loop exit
PB: predicated region body
PF: predicated region fallthrough
CT: control target
= control target key end

     0   :  { %9 = vsyncpa [#allocation5], 0  ;;  %s4601_s0 = inlined_call_operand.hbm [shape: f32[2,16,16,128], index: 0, kind: input, shape index: {}]   ;;  %s4602_s1 = inlined_call_operand.hbm [shape: bf16[1152,128], index: 1, kind: input, shape index: {}]   ;;  %s4603_s2 = inlined_call_operand.hbm [shape: f32[2,16,16,128], index: 2, kind: output, shape index: {0}]   ;;  %s4604_s3 = inlined_call_operand.hbm [shape: f32[2,2,128], index: 3, kind: output, shape index: {1}]  }
   0x1   :  { %11 = vsyncpa [#allocation5 + $0x1], 0 }
   0x2   :  { %12 = vsyncpa [#allocation8], 0 }
   0x3   :  { %13 = vsyncpa [#allocation6], 0 }
   0x4   :  { %15 = vsyncpa [#allocation6 + $0x1], 0 }
   0x5   :  { %16 = vsyncpa [#allocation11], 0 }
   0x6   :  { %18 = vsyncpa [#allocation11 + $0x1], 0  ;;  %s3675_s12 = smov 0   ;;  %s3677_s13 = smov 0  }
   0x7   :  { %s3679_s14 = smov 0   ;;  %s3681_s15 = smov 0  }
   0x8 LB: > { %s3696_s16 = sadd.s32 4294967295, %s3641_s15   ;;  %s2710_s17 = sadd.s32 4294967294, %s3641_s15   ;;  %s3641_s15 = sphi %s3681_s15, %s4624_s15   ;;  %s3637_s14 = sphi %s3679_s14, %s4623_s14   ;;  %s3633_s13 = sphi %s3677_s13, %s4622_s13   ;;  %s3629_s12 = sphi %s3675_s12, %s4621_s12  }
   0x9   : > { %p44_p0 = scmp.ne.s32.totalorder %s3633_s13, %s3629_s12  ;;  %p4605_p1 = scmp.eq.s32.totalorder %s3696_s16, 0 }
   0xa   : > { %p95_p3 = scmp.eq.s32.totalorder %s2710_s17, 1  ;;  %p2711_p5 = scmp.ge.s32.totalorder %s3641_s15, 1 }
   0xb   : > { %p3705_p4 = por %p4605_p1, %p44_p0  ;;  %p128_p7 = scmp.lt.s32.totalorder %s3641_s15, 3 }
   0xc   : > { %p3710_p6 = por %p95_p3, %p44_p0  ;;  %s3643_s21 = smov [#allocation7]  }
   0xd   : > { %s4608_s18 = scalar_select %p3705_p4, 1, 0 }
   0xe   : > { %s4609_s19 = scalar_select %p3710_p6, 1, 0 }
   0xf   : > { %p3715_p8 = pnand %p2711_p5, %p128_p7  ;;  %s140_s22 = sshll.u32 %s3643_s21, 4  ;;  %s3719_s22 = int_to_ptr.vmem [resolvable:$true] %s140_s22 }
  0x10   : > { %s3731_s24 = sadd.s32 1, %s3641_s15   ;;  %s31_s25 = sadd.s32 1, %s3637_s14 }
  0x11   : > { %s4610_s20 = scalar_select %p3715_p8, 1, 0 }
  0x12   : > { %p3349_p9 = pneg %p3715_p8  ;;  %s28_s26 = ssub.s32 %s3641_s15, %s3731_s24 }
  0x13   : > { %s3481_s29 = scalar_lea.hbm %s4602_s1, 9216 }
  0x14   : > { %p3726_p11 = pnand %p3349_p9, %p4605_p1  ;;  %p3482_p12 = scmp.ne.s32.totalorder %s4602_s1, %s3481_s29 }
  0x15   : > { %p3488_p5 = scmp.lt.u32.totalorder %s3481_s29, %s4602_s1 }
  0x16   : > { %p3483_p13 = pneg %p3726_p11 }
  0x18   : > { %p3484_p0 = pnand %p3483_p13, %p3482_p12 }
  0x1a   : > { %p3485_p3 = pneg %p3484_p0 }
  0x1c   : > { %p3490_p7 = pnand %p3488_p5, %p3485_p3 }
  0x1e   : > { %3493 = shalt.err (!%p3490_p7)
}
  0x1f   : > { %s3494_s7 = scalar_lea.vmem %s3719_s22, 9216  ;;  %p3502_p2 = scmp.lt.s32.totalorder %s3719_s22, %s3719_s22 }
  0x20   : > { %p3495_p9 = scmp.ne.s32.totalorder %s3719_s22, %s3494_s7  ;;  %p3503_p6 = scmp.lt.s32.totalorder %s3494_s7, %s3494_s7 }
  0x22   : > { %p3497_p10 = pnand %p3495_p9, %p3483_p13  ;;  %p3504_p4 = por %p3503_p6, %p3502_p2 }
  0x24   : > { %p3498_p1 = pneg %p3497_p10 }
  0x26   : > { %p3505_p8 = pnand %p3504_p4, %p3498_p1 }
  0x28   : > { %3508 = shalt.err (!%p3505_p8)
}
  0x29   : > { %s3644_s8 = smov 64   ;;  %s3645_s9 = smov 4  }
  0x2a   : > { %3352 = dma.hbm_to_vmem [thread:$0]  (!%p3726_p11), %s4602_s1, 9216, %s3719_s22, [#allocation8], %s3644_s8, %s3644_s8, %s3645_s9  }
  0x2b   : > { %p29_p2 = scmp.eq.s32.totalorder %s28_s26, 0  ;;  %p38_p1 = scmp.ne.s32.totalorder %s3637_s14, %s3633_s13 }
  0x2c   : > { %p39_p4 = scmp.eq.s32.totalorder %s3641_s15, 0  ;;  %p3365_p6 = scmp.lt.s32.totalorder %s3641_s15, 2 }
  0x2d   : > { %s3762_s17 = scalar_select %p29_p2, %s3637_s14, %s31_s25  }
  0x2e   : > { %p40_p8 = por %p39_p4, %p38_p1  ;;  %p4612_p10 = scmp.eq.s32.totalorder %s3696_s16, 1 }
  0x2f   : > { %s154_s27 = sand.u32 1, %s3637_s14   ;;  %s2801_s28 = sshll.u32 %s3641_s15, 12 }
  0x30   : > { %p3766_p12 = por %p4612_p10, %p38_p1  ;;  %s2714_s29 = sshll.u32 %s154_s27, 8 }
  0x31   : > { %s3775_s4 = scalar_lea.hbm %s4601_s0, %s2801_s28  ;;  %s158_s22 = scalar_lea.vmem [#allocation4], %s2714_s29 }
  0x32   : > { %s165_s25 = sshll.u32 %s158_s22, 4  ;;  %p3777_p11 = pnand %p3365_p6, %p40_p8  ;;  %s3781_s25 = int_to_ptr.vmem [resolvable:$true] %s165_s25 }
  0x33   : > { %s3783_s5 = scalar_lea.sflag [#allocation5], %s154_s27  ;;  %s3509_s6 = scalar_lea.hbm %s3775_s4, 4096 }
  0x34   : > { %p3510_p13 = scmp.ne.s32.totalorder %s3775_s4, %s3509_s6  ;;  %p3511_p0 = pneg %p3777_p11 }
  0x35   : > { %s3514_s9 = scalar_lea.hbm %s4601_s0, 8192  ;;  %p3515_p7 = scmp.lt.u32.totalorder %s3775_s4, %s4601_s0 }
  0x36   : > { %p3512_p3 = pnand %p3511_p0, %p3510_p13  ;;  %p3516_p9 = scmp.lt.u32.totalorder %s3514_s9, %s3509_s6 }
  0x37   : > { %p3518_p1 = scmp.lt.u32.totalorder %s3509_s6, %s3775_s4 }
  0x38   : > { %p3513_p5 = pneg %p3512_p3  ;;  %p3517_p2 = por %p3516_p9, %p3515_p7 }
  0x3a   : > { %p3519_p4 = por %p3518_p1, %p3517_p2 }
  0x3c   : > { %p3520_p6 = pnand %p3519_p4, %p3513_p5 }
  0x3e   : > { %3523 = shalt.err (!%p3520_p6)
}
  0x3f   : > { %s3524_s27 = scalar_lea.vmem %s3781_s25, 4096  ;;  %s3646_s28 = smov [#allocation4]  }
  0x40   : > { %p3525_p8 = scmp.ne.s32.totalorder %s3781_s25, %s3524_s27  ;;  %s3529_s29 = sshll.u32 %s3646_s28, 4  ;;  %s3530_s29 = int_to_ptr.vmem [resolvable:$false] %s3529_s29 }
  0x41   : > { %s3531_s23 = scalar_lea.vmem %s3530_s29, 8192  ;;  %p3532_p3 = scmp.lt.s32.totalorder %s3781_s25, %s3530_s29 }
  0x42   : > { %p3527_p10 = pnand %p3525_p8, %p3511_p0  ;;  %p3533_p7 = scmp.lt.s32.totalorder %s3531_s23, %s3524_s27 }
  0x44   : > { %p3528_p13 = pneg %p3527_p10  ;;  %p3534_p9 = por %p3533_p7, %p3532_p3 }
  0x46   : > { %p3535_p2 = pnand %p3534_p9, %p3528_p13 }
  0x48   : > { %3538 = shalt.err (!%p3535_p2)
}
  0x49   : > { %s3647_s30 = smov 128   ;;  %s3648_s22 = smov 8  }
  0x4a   : > { %3356 = dma.hbm_to_vmem [thread:$0]  (!%p3777_p11), %s3775_s4, 4096, %s3781_s25, %s3783_s5, %s3647_s30, %s3647_s30, %s3648_s22  }
  0x4b   : > { %p4615_p0 = scmp.ne.s32.totalorder %s4610_s20, 0 }
  0x4c   : > { %s3814_s6 = sand.u32 (!%p4615_p0), 1, %s3633_s13   ;;  %p4616_p5 = scmp.ne.s32.totalorder (!%p4615_p0), %s4608_s18, 0 }
  0x4d   : > { %177 = sbr.rel (%p4615_p0) target bundleno = 665 (0x299), region = 28  ;;  %s2718_s7 = sshll.u32 (!%p4615_p0), %s3814_s6, 8 }
  0x4e   : > { %s180_s8 = scalar_lea.sflag (!%p4615_p0), [#allocation5], %s3814_s6  ;;  %s3820_s9 = scalar_lea.vmem (!%p4615_p0), [#allocation4], %s2718_s7 }
  0x54   : > { %3612 = dma.done.wait (%p4616_p5), %s180_s8, 4096  }
  0x55   : > { %3614 = vsyncadd (%p4616_p5), %s180_s8, 4294963200  ;;  %p4617_p11 = scmp.eq.s32.totalorder %s3696_s16, 0 }
  0x57   : > { %3616 = dma.done.wait (%p4617_p11), [#allocation8], 9216   ;;  %p4618_p1 = pmov %p4617_p11 }
  0x58   : > { %v3649_v0 = vmov 0.0   ;;  %v3408_v1 = vld [vmem:[#allocation7 + $0x40] sm:$0xff]   ;;  %v3410_v3 = vld [vmem:[#allocation7 + $0x48] sm:$0xff]   ;;  %v3412_v5 = vld [vmem:[#allocation7 + $0x50] sm:$0xff]   ;;  %v3650_v46 = vmov 0.0|0.0   ;;  %s4437_s18 = scalar_lea.vmem [#allocation9], %s2718_s7 }
  0x59   : > { %3618 = vsyncadd (%p4618_p1), [#allocation8], 4294958080  ;;  %248 = vst [vmem:[#allocation2] sm:$0xff] %v3649_v0  ;;  %v3409_v2 = vld [vmem:[#allocation7] sm:$0xff]   ;;  %2803 = vmatprep.subr.bf16.mxu0 %v3408_v1  ;;  %3323 = vmatprep.subr.bf16.mxu1 %v3408_v1  ;;  %v3411_v4 = vld [vmem:[#allocation7 + $0x8] sm:$0xff]   ;;  %s2802_s20 = sshll.u32 %s3696_s16, 12 }
  0x5a   : > { %249 = vst [vmem:[#allocation2 + $0x8] sm:$0xff] %v3649_v0  ;;  %250 = vst [vmem:[#allocation2 + $0x10] sm:$0x3] %v3649_v0  ;;  %2804 = vmatpush3.bf16.msra.mxu0 %v3409_v2  ;;  %3331 = vmatpush3.bf16.msra.mxu1 %v3409_v2  ;;  %v3413_v6 = vld [vmem:[#allocation7 + $0x10] sm:$0xff]   ;;  %v3414_v7 = vld [vmem:[#allocation7 + $0x58] sm:$0xff]   ;;  %s2582_s4 = sshll.u32 %s4437_s18, 4  ;;  %s4522_s5 = scalar_lea.hbm %s4603_s2, %s2802_s20  ;;  %s4524_s4 = int_to_ptr.vmem [resolvable:$true] %s2582_s4 }
  0x5b   : > { %252 = vst [vmem:[#allocation2 + $0x198] sm:$0xff] %v3649_v0  ;;  %253 = vst [vmem:[#allocation2 + $0x1a0] sm:$0xff] %v3649_v0  ;;  %2805 = vmatprep.subr.bf16.mxu0 %v3410_v3  ;;  %3324 = vmatprep.subr.bf16.mxu1 %v3410_v3  ;;  %v3415_v8 = vld [vmem:[#allocation7 + $0x18] sm:$0xff]   ;;  %v3416_v9 = vld [vmem:[#allocation7 + $0x60] sm:$0xff]   ;;  %s2564_s10 = scalar_lea.sflag [#allocation6], %s3814_s6  ;;  %s3539_s11 = scalar_lea.vmem %s4524_s4, 4096 }
  0x5c   : > { %254 = vst [vmem:[#allocation2 + $0x1a8] sm:$0x3] %v3649_v0  ;;  %256 = vst [vmem:[#allocation2 + $0x18] sm:$0x1] %v3649_v0  ;;  %v3417_v10 = vld [vmem:[#allocation7 + $0x20] sm:$0xff]   ;;  %v3418_v11 = vld [vmem:[#allocation7 + $0x68] sm:$0xff]   ;;  %p3540_p4 = scmp.ne.s32.totalorder %s4524_s4, %s3539_s11 }
  0x5d   : > { %257 = vst [vmem:[#allocation2 + $0x30] sm:$0x1] %v3649_v0  ;;  %258 = vst [vmem:[#allocation2 + $0x48] sm:$0x1] %v3649_v0  ;;  %v238_v14 = vld [vmem:[%s3820_s9 + $0xb0] sm:$0xff]  ;;  %v239_v16 = vld [vmem:[%s3820_s9 + $0xb8] sm:$0xff] }
  0x5e   : > { %259 = vst [vmem:[#allocation2 + $0x60] sm:$0x1] %v3649_v0  ;;  %260 = vst [vmem:[#allocation2 + $0x78] sm:$0x1] %v3649_v0  ;;  %2806 = vmatpush3.bf16.msra.mxu0 %v3411_v4  ;;  %3332 = vmatpush3.bf16.msra.mxu1 %v3411_v4  ;;  %v428_v17 = vpack.c.bf16 %v239_v16, %v238_v14  ;;  %v3419_v18 = vld [vmem:[#allocation7 + $0x28] sm:$0xff]   ;;  %v3420_v19 = vld [vmem:[#allocation7 + $0x70] sm:$0xff]   ;;  %p3541_p6 = pnand %p3540_p4, %p3766_p12 }
  0x5f   : > { %261 = vst [vmem:[#allocation2 + $0x90] sm:$0x1] %v3649_v0  ;;  %262 = vst [vmem:[#allocation2 + $0xa8] sm:$0x1] %v3649_v0  ;;  %2807 = vmatprep.subr.bf16.mxu0 %v3412_v5  ;;  %3325 = vmatprep.subr.bf16.mxu1 %v3412_v5  ;;  %v3421_v20 = vld [vmem:[#allocation7 + $0x30] sm:$0xff]   ;;  %v216_v21 = vld [vmem:[%s3820_s9] sm:$0xff] }
  0x60   : > { %263 = vst [vmem:[#allocation2 + $0xc0] sm:$0x1] %v3649_v0  ;;  %264 = vst [vmem:[#allocation2 + $0xd8] sm:$0x1] %v3649_v0  ;;  %1745 = vmatprep.mubr.bf16.mxu1 %v428_v17  ;;  %v217_v22 = vld [vmem:[%s3820_s9 + $0x8] sm:$0xff]  ;;  %v3422_v23 = vld [vmem:[#allocation7 + $0x78] sm:$0xff]   ;;  %p3542_p8 = pneg %p3541_p6 }
  0x61   : > { %265 = vst [vmem:[#allocation2 + $0xf0] sm:$0x1] %v3649_v0  ;;  %266 = vst [vmem:[#allocation2 + $0x108] sm:$0x1] %v3649_v0  ;;  %v384_v12 = vld [vmem:[#allocation2 + $0x1] sm:$0xff]  ;;  %v385_v13 = vld [vmem:[#allocation2 + $0x9] sm:$0xff]  ;;  %v3838_v35 = vpack.c.bf16 %v217_v22, %v216_v21 }
  0x62   : > { %267 = vst [vmem:[#allocation2 + $0x120] sm:$0x1] %v3649_v0  ;;  %268 = vst [vmem:[#allocation2 + $0x138] sm:$0x1] %v3649_v0  ;;  %2808 = vmatpush3.bf16.msra.mxu0 %v3413_v6  ;;  %3333 = vmatpush3.bf16.msra.mxu1 %v3413_v6  ;;  %v416_v15 = vpack.c.bf16 %v385_v13, %v384_v12  ;;  %v240_v24 = vld [vmem:[%s3820_s9 + $0xc0] sm:$0xff]  ;;  %v241_v25 = vld [vmem:[%s3820_s9 + $0xc8] sm:$0xff] }
  0x63   : > { %269 = vst [vmem:[#allocation2 + $0x150] sm:$0x1] %v3649_v0  ;;  %270 = vst [vmem:[#allocation2 + $0x168] sm:$0x1] %v3649_v0  ;;  %2809 = vmatprep.subr.bf16.mxu0 %v3414_v7  ;;  %3326 = vmatprep.subr.bf16.mxu1 %v3414_v7  ;;  %v3423_v26 = vld [vmem:[#allocation7 + $0x38] sm:$0xff]   ;;  %v3424_v28 = vld [vmem:[#allocation7 + $0xc0] sm:$0xff]   ;;  %v429_v39 = vpack.c.bf16 %v241_v25, %v240_v24 }
  0x64   : > { %271 = vst [vmem:[#allocation2 + $0x180] sm:$0x1] %v3649_v0  ;;  %272 = vst [vmem:[#allocation2 + $0x29] sm:$0x1] %v3649_v0  ;;  %1649 = vmatprep.mubr.bf16.mxu0 %v416_v15  ;;  %v3425_v30 = vld [vmem:[#allocation7 + $0x140] sm:$0xff]   ;;  %v3428_v34 = vld [vmem:[#allocation7 + $0xc8] sm:$0xff]  }
  0x65   : > { %273 = vst [vmem:[#allocation2 + $0x41] sm:$0x1] %v3649_v0  ;;  %274 = vst [vmem:[#allocation2 + $0x59] sm:$0x1] %v3649_v0  ;;  %v3426_v32 = vld [vmem:[#allocation7 + $0x80] sm:$0xff]   ;;  %v3433_v36 = vld [vmem:[#allocation7 + $0x148] sm:$0xff]  }
  0x66   : > { %275 = vst [vmem:[#allocation2 + $0x71] sm:$0x1] %v3649_v0  ;;  %276 = vst [vmem:[#allocation2 + $0x89] sm:$0x1] %v3649_v0  ;;  %2810 = vmatpush3.bf16.msra.mxu0 %v3415_v8  ;;  %3334 = vmatpush3.bf16.msra.mxu1 %v3415_v8  ;;  %v3427_v33 = vld [vmem:[#allocation7 + $0x100] sm:$0xff]   ;;  %v218_v37 = vld [vmem:[%s3820_s9 + $0x10] sm:$0xff] }
  0x67   : > { %277 = vst [vmem:[#allocation2 + $0xa1] sm:$0x1] %v3649_v0  ;;  %278 = vst [vmem:[#allocation2 + $0xb9] sm:$0x1] %v3649_v0  ;;  %2811 = vmatprep.subr.bf16.mxu0 %v3416_v9  ;;  %3327 = vmatprep.subr.bf16.mxu1 %v3416_v9  ;;  %v3429_v38 = vld [vmem:[#allocation7 + $0x88] sm:$0xff]   ;;  %v219_v43 = vld [vmem:[%s3820_s9 + $0x18] sm:$0xff] }
  0x68   : > { %279 = vst [vmem:[#allocation2 + $0xd1] sm:$0x1] %v3649_v0  ;;  %280 = vst [vmem:[#allocation2 + $0xe9] sm:$0x1] %v3649_v0  ;;  %v3435_v42 = vld [vmem:[#allocation7 + $0x108] sm:$0xff]   ;;  %v242_v44 = vld [vmem:[%s3820_s9 + $0xd0] sm:$0xff]  ;;  %v3853_v56 = vpack.c.bf16 %v219_v43, %v218_v37 }
  0x69   : > { %281 = vst [vmem:[#allocation2 + $0x101] sm:$0x1] %v3649_v0  ;;  %282 = vst [vmem:[#allocation2 + $0x119] sm:$0x1] %v3649_v0  ;;  %v243_v45 = vld [vmem:[%s3820_s9 + $0xd8] sm:$0xff]  ;;  %v3430_v49 = vld [vmem:[#allocation7 + $0xd0] sm:$0xff]  }
  0x6a   : > { %283 = vst [vmem:[#allocation2 + $0x131] sm:$0x1] %v3649_v0  ;;  %284 = vst [vmem:[#allocation2 + $0x149] sm:$0x1] %v3649_v0  ;;  %2812 = vmatpush3.bf16.msra.mxu0 %v3417_v10  ;;  %3335 = vmatpush3.bf16.msra.mxu1 %v3417_v10  ;;  %v3431_v50 = vld [vmem:[#allocation7 + $0x90] sm:$0xff]   ;;  %v220_v53 = vld [vmem:[%s3820_s9 + $0x20] sm:$0xff]  ;;  %v430_v59 = vpack.c.bf16 %v243_v45, %v242_v44 }
  0x6b   : > { %285 = vst [vmem:[#allocation2 + $0x161] sm:$0x1] %v3649_v0  ;;  %286 = vst [vmem:[#allocation2 + $0x179] sm:$0x1] %v3649_v0  ;;  %2813 = vmatprep.subr.bf16.mxu0 %v3418_v11  ;;  %3328 = vmatprep.subr.bf16.mxu1 %v3418_v11  ;;  %v221_v54 = vld [vmem:[%s3820_s9 + $0x28] sm:$0xff]  ;;  %v244_v55 = vld [vmem:[%s3820_s9 + $0xe0] sm:$0xff] }
  0x6c   : > { %287 = vst [vmem:[#allocation2 + $0x191] sm:$0x1] %v3649_v0  ;;  %310 = vst [vmem:[#allocation2 + $0x121] sm:$0xff] %v238_v14  ;;  %v245_v57 = vld [vmem:[%s3820_s9 + $0xe8] sm:$0xff]  ;;  %v3432_v58 = vld [vmem:[#allocation7 + $0xd8] sm:$0xff]   ;;  %v3863_v7 = vpack.c.bf16 %v221_v54, %v220_v53  ;;  %s3651_s27 = smov [#allocation9]  }
  0x6d   : > { %311 = vst [vmem:[#allocation2 + $0x129] sm:$0xff] %v239_v16  ;;  %288 = vst [vmem:[#allocation2 + $0x19] sm:$0xff] %v216_v21  ;;  %v3434_v60 = vld [vmem:[#allocation7 + $0x98] sm:$0xff]   ;;  %v3436_v0 = vld [vmem:[#allocation7 + $0xe0] sm:$0xff]   ;;  %v431_v9 = vpack.c.bf16 %v245_v57, %v244_v55  ;;  %s3543_s28 = sshll.u32 %s3651_s27, 4  ;;  %s3544_s28 = int_to_ptr.vmem [resolvable:$false] %s3543_s28 }
  0x6e   : > { %2814 = vmatpush3.bf16.msra.mxu0 %v3419_v18  ;;  %3336 = vmatpush3.bf16.msra.mxu1 %v3419_v18  ;;  %289 = vst [vmem:[#allocation2 + $0x21] sm:$0xff] %v217_v22  ;;  %312 = vst [vmem:[#allocation2 + $0x139] sm:$0xff] %v240_v24  ;;  %v3441_v1 = vld [vmem:[#allocation7 + $0x150] sm:$0xff]   ;;  %v3437_v6 = vld [vmem:[#allocation7 + $0xa0] sm:$0xff]   ;;  %s3545_s29 = scalar_lea.vmem %s3544_s28, 8192  ;;  %p3546_p10 = scmp.lt.s32.totalorder %s4524_s4, %s3544_s28 }
  0x6f   : > { %2815 = vmatprep.subr.bf16.mxu0 %v3420_v19  ;;  %3329 = vmatprep.subr.bf16.mxu1 %v3420_v19  ;;  %313 = vst [vmem:[#allocation2 + $0x141] sm:$0xff] %v241_v25  ;;  %290 = vst [vmem:[#allocation2 + $0x31] sm:$0xff] %v218_v37  ;;  %v3443_v3 = vld [vmem:[#allocation7 + $0x110] sm:$0xff]   ;;  %v3438_v8 = vld [vmem:[#allocation7 + $0xe8] sm:$0xff]   ;;  %p3547_p13 = scmp.lt.s32.totalorder %s3545_s29, %s3539_s11 }
  0x70   : > { %291 = vst [vmem:[#allocation2 + $0x39] sm:$0xff] %v219_v43  ;;  %314 = vst [vmem:[#allocation2 + $0x151] sm:$0xff] %v242_v44  ;;  %v222_v10 = vld [vmem:[%s3820_s9 + $0x30] sm:$0xff]  ;;  %v223_v11 = vld [vmem:[%s3820_s9 + $0x38] sm:$0xff] }
  0x71   : > { %315 = vst [vmem:[#allocation2 + $0x159] sm:$0xff] %v243_v45  ;;  %292 = vst [vmem:[#allocation2 + $0x49] sm:$0xff] %v220_v53  ;;  %v3439_v12 = vld [vmem:[#allocation7 + $0xa8] sm:$0xff]   ;;  %v3440_v16 = vld [vmem:[#allocation7 + $0xf0] sm:$0xff]   ;;  %p3548_p3 = por %p3547_p13, %p3546_p10 }
  0x72   : > { %2816 = vmatpush3.bf16.msra.mxu0 %v3421_v20  ;;  %3337 = vmatpush3.bf16.msra.mxu1 %v3421_v20  ;;  %293 = vst [vmem:[#allocation2 + $0x51] sm:$0xff] %v221_v54  ;;  %316 = vst [vmem:[#allocation2 + $0x169] sm:$0xff] %v244_v55  ;;  %v3448_v18 = vld [vmem:[#allocation7 + $0x158] sm:$0xff]   ;;  %v224_v20 = vld [vmem:[%s3820_s9 + $0x40] sm:$0xff] }
  0x73   : > { %v344_v27 = vld [vmem:[#allocation2 + $0x120] sm:$0xff]  ;;  %2817 = vmatprep.subr.bf16.mxu0 %v3422_v23  ;;  %3330 = vmatprep.subr.bf16.mxu1 %v3422_v23  ;;  %317 = vst [vmem:[#allocation2 + $0x171] sm:$0xff] %v245_v57  ;;  %294 = vst [vmem:[#allocation2 + $0x61] sm:$0xff] %v222_v10  ;;  %v3449_v19 = vld [vmem:[#allocation7 + $0x118] sm:$0xff]   ;;  %p3549_p7 = pnand %p3548_p3, %p3542_p8 }
  0x74   : > { %v345_v29 = vld [vmem:[#allocation2 + $0x128] sm:$0xff]  ;;  %v322_v40 = vld [vmem:[#allocation2 + $0x18] sm:$0xff]  ;;  %295 = vst [vmem:[#allocation2 + $0x69] sm:$0xff] %v223_v11  ;;  %296 = vst [vmem:[#allocation2 + $0x79] sm:$0xff] %v224_v20 }
  0x75   : > { %v3836_v31 = vpack.c.bf16 %v345_v29, %v344_v27  ;;  %v323_v41 = vld [vmem:[#allocation2 + $0x20] sm:$0xff]  ;;  %v346_v47 = vld [vmem:[#allocation2 + $0x138] sm:$0xff]  ;;  %v227_v27 = vld [vmem:[%s3820_s9 + $0x58] sm:$0xff] }
  0x76   : > { %2818 = vmatpush3.bf16.msra.mxu0 %v3423_v26  ;;  %3338 = vmatpush3.bf16.msra.mxu1 %v3423_v26  ;;  %v347_v48 = vld [vmem:[#allocation2 + $0x140] sm:$0xff]  ;;  %v3846_v51 = vpack.c.bf16 %v323_v41, %v322_v40  ;;  %v324_v61 = vld [vmem:[#allocation2 + $0x30] sm:$0xff]  ;;  %v225_v21 = vld [vmem:[%s3820_s9 + $0x48] sm:$0xff]  ;;  %v3879_v26 = vpack.c.bf16 %v223_v11, %v222_v10  ;;  %299 = vst [vmem:[#allocation2 + $0x99] sm:$0xff] %v227_v27 }
  0x77   : > { %2915 = vmatprep.subr.bf16.mxu1 %v3424_v28  ;;  %3027 = vmatprep.subr.bf16.mxu0 %v3425_v30  ;;  %v3848_v52 = vpack.c.bf16 %v347_v48, %v346_v47  ;;  %v325_v62 = vld [vmem:[#allocation2 + $0x38] sm:$0xff]  ;;  %v348_v63 = vld [vmem:[#allocation2 + $0x150] sm:$0xff]  ;;  %297 = vst [vmem:[#allocation2 + $0x81] sm:$0xff] %v225_v21  ;;  %v3877_v24 = vld [vmem:[%s3820_s9 + $0x50] sm:$0xff]  ;;  %v3897_v44 = vpack.c.bf16 %v225_v21, %v224_v20 }
  0x78   : > { %v349_v2 = vld [vmem:[#allocation2 + $0x158] sm:$0xff]  ;;  %v3859_v4 = vpack.c.bf16 %v325_v62, %v324_v61  ;;  %v326_v13 = vld [vmem:[#allocation2 + $0x48] sm:$0xff]  ;;  %v3442_v25 = vld [vmem:[#allocation7 + $0xb0] sm:$0xff]   ;;  %298 = vst [vmem:[#allocation2 + $0x91] sm:$0xff] %v3877_v24 }
  0x79   : > { %1650 = vmatmul.mubr.bf16.vlgmr.msra.gmra.mrb[0].mxu0 %v3650_v46  ;;  %1746 = vmatmul.mubr.bf16.vlgmr.msra.gmra.mrb[0].mxu1 %v3836_v31  ;;  %v3861_v5 = vpack.c.bf16 %v349_v2, %v348_v63  ;;  %v327_v14 = vld [vmem:[#allocation2 + $0x50] sm:$0xff]  ;;  %v350_v15 = vld [vmem:[#allocation2 + $0x168] sm:$0xff]  ;;  %v3891_v40 = vld [vmem:[%s3820_s9 + $0x68] sm:$0xff]  ;;  %v3923_v63 = vpack.c.bf16 %v227_v27, %v3877_v24 }
  0x7a   : > { %2916 = vmatpush3.bf16.msra.mxu1 %v3426_v32  ;;  %3028 = vmatpush3.bf16.msra.mxu0 %v3427_v33  ;;  %v351_v17 = vld [vmem:[#allocation2 + $0x170] sm:$0xff]  ;;  %v3872_v22 = vpack.c.bf16 %v327_v14, %v326_v13  ;;  %v3444_v28 = vld [vmem:[#allocation7 + $0xf8] sm:$0xff]   ;;  %v328_v30 = vld [vmem:[#allocation2 + $0x60] sm:$0xff]  ;;  %301 = vst [vmem:[#allocation2 + $0xb1] sm:$0xff] %v3891_v40 }
  0x7b   : > { %2917 = vmatprep.subr.bf16.mxu1 %v3428_v34  ;;  %1657 = vmatprep.mubr.bf16.mxu0 %v3838_v35  ;;  %v3874_v23 = vpack.c.bf16 %v351_v17, %v350_v15  ;;  %v3445_v29 = vld [vmem:[#allocation7 + $0xb8] sm:$0xff]   ;;  %v3450_v34 = vld [vmem:[#allocation7 + $0x160] sm:$0xff]   ;;  %v3451_v45 = vld [vmem:[#allocation7 + $0x1c8] sm:$0xff]  }
  0x7c   : > { %1753 = vmatprep.mubr.bf16.mxu1 %v429_v39  ;;  %3029 = vmatprep.subr.bf16.mxu0 %v3433_v36  ;;  %v448_v32 = vld [vmem:[#allocation2 + $0x2] sm:$0xff]  ;;  %v449_v33 = vld [vmem:[#allocation2 + $0xa] sm:$0xff]  ;;  %v450_v46 = vld [vmem:[#allocation2 + $0x1a] sm:$0xff] }
  0x7d   : > { %v329_v36 = vld [vmem:[#allocation2 + $0x68] sm:$0xff]  ;;  %v3452_v37 = vld [vmem:[#allocation7 + $0x120] sm:$0xff]   ;;  %v3453_v48 = vld [vmem:[#allocation7 + $0x188] sm:$0xff]  }
  0x7e   : > { %2918 = vmatpush3.bf16.msra.mxu1 %v3429_v38  ;;  %3030 = vmatpush3.bf16.msra.mxu0 %v3435_v42  ;;  %v3446_v38 = vld [vmem:[#allocation7 + $0x1c0] sm:$0xff]   ;;  %v3894_v41 = vpack.c.bf16 %v329_v36, %v328_v30  ;;  %v480_v42 = vpack.c.bf16 %v449_v33, %v448_v32  ;;  %v451_v47 = vld [vmem:[#allocation2 + $0x22] sm:$0xff]  ;;  %v330_v53 = vld [vmem:[#allocation2 + $0x78] sm:$0xff] }
  0x7f   : > { %2919 = vmatprep.subr.bf16.mxu1 %v3430_v49  ;;  %3031 = vmatprep.subr.bf16.mxu0 %v3441_v1  ;;  %v3888_v39 = vld [vmem:[%s3820_s9 + $0x60] sm:$0xff]  ;;  %v3454_v49 = vld [vmem:[#allocation7 + $0x168] sm:$0xff]   ;;  %v331_v55 = vld [vmem:[#allocation2 + $0x80] sm:$0xff]  ;;  %v3918_v61 = vpack.c.bf16 %v451_v47, %v450_v46 }
  0x80   : > { %300 = vst [vmem:[#allocation2 + $0xa9] sm:$0xff] %v3888_v39  ;;  %v3447_v43 = vld [vmem:[#allocation7 + $0x180] sm:$0xff]   ;;  %v3455_v54 = vld [vmem:[#allocation7 + $0x128] sm:$0xff]   ;;  %v3456_v57 = vld [vmem:[#allocation7 + $0x1d0] sm:$0xff]  }
  0x81   : > { %1658 = vmatmul.mubr.bf16.gmra.mrb[4].mxu0 %v3846_v51  ;;  %1754 = vmatmul.mubr.bf16.gmra.mrb[4].mxu1 %v3848_v52  ;;  %v3457_v62 = vld [vmem:[#allocation7 + $0x190] sm:$0xff]   ;;  %v333_v10 = vld [vmem:[#allocation2 + $0x98] sm:$0xff]  ;;  %v3460_v11 = vld [vmem:[#allocation7 + $0x1d8] sm:$0xff]  }
  0x82   : > { %2920 = vmatpush3.bf16.msra.mxu1 %v3431_v50  ;;  %1665 = vmatprep.mubr.bf16.mxu0 %v3853_v56  ;;  %v3900_v50 = vld [vmem:[%s3820_s9 + $0x70] sm:$0xff]  ;;  %v3462_v15 = vld [vmem:[#allocation7 + $0x178] sm:$0xff]   ;;  %v3464_v27 = vld [vmem:[#allocation7 + $0x1e0] sm:$0xff]  }
  0x83   : > { %2921 = vmatprep.subr.bf16.mxu1 %v3432_v58  ;;  %1761 = vmatprep.mubr.bf16.mxu1 %v430_v59  ;;  %302 = vst [vmem:[#allocation2 + $0xc1] sm:$0xff] %v3900_v50  ;;  %v3911_v58 = vld [vmem:[%s3820_s9 + $0x80] sm:$0xff]  ;;  %v3914_v59 = vld [vmem:[%s3820_s9 + $0x88] sm:$0xff]  ;;  %v3459_v1 = vld [vmem:[#allocation7 + $0x130] sm:$0xff]  }
  0x84   : > { %3032 = vmatpush3.bf16.msra.mxu0 %v3443_v3  ;;  %304 = vst [vmem:[#allocation2 + $0xd9] sm:$0xff] %v3911_v58  ;;  %305 = vst [vmem:[#allocation2 + $0xe1] sm:$0xff] %v3914_v59  ;;  %v3926_v2 = vld [vmem:[%s3820_s9 + $0x90] sm:$0xff]  ;;  %v452_v3 = vld [vmem:[#allocation2 + $0x32] sm:$0xff]  ;;  %v3978_v47 = vpack.c.bf16 %v3914_v59, %v3911_v58 }
  0x85   : > { %3033 = vmatprep.subr.bf16.mxu0 %v3448_v18  ;;  %306 = vst [vmem:[#allocation2 + $0xf1] sm:$0xff] %v3926_v2  ;;  %v3463_v17 = vld [vmem:[#allocation7 + $0x138] sm:$0xff]   ;;  %v3946_v18 = vld [vmem:[%s3820_s9 + $0xa0] sm:$0xff]  ;;  %v3469_v36 = vld [vmem:[#allocation7 + $0x1a8] sm:$0xff]  }
  0x86   : > { %2922 = vmatpush3.bf16.msra.mxu1 %v3434_v60  ;;  %v3916_v60 = vpack.c.bf16 %v331_v55, %v330_v53  ;;  %308 = vst [vmem:[#allocation2 + $0x109] sm:$0xff] %v3946_v18  ;;  %v454_v24 = vld [vmem:[#allocation2 + $0x4a] sm:$0xff]  ;;  %v3472_v46 = vld [vmem:[#allocation7 + $0x1b0] sm:$0xff]  }
  0x87   : > { %2923 = vmatprep.subr.bf16.mxu1 %v3436_v0  ;;  %v3458_v0 = vld [vmem:[#allocation7 + $0x170] sm:$0xff]   ;;  %v334_v20 = vld [vmem:[#allocation2 + $0xa8] sm:$0xff]  ;;  %v335_v21 = vld [vmem:[#allocation2 + $0xb0] sm:$0xff] }
  0x88   : > { %3034 = vmatpush3.bf16.msra.mxu0 %v3449_v19  ;;  %v3949_v19 = vld [vmem:[%s3820_s9 + $0xa8] sm:$0xff]  ;;  %v3960_v30 = vpack.c.bf16 %v335_v21, %v334_v20  ;;  %v246_v53 = vld [vmem:[%s3820_s9 + $0xf0] sm:$0xff] }
  0x89   : > { %1666 = vmatmul.mubr.bf16.gmra.mrb[8].mxu0 %v3859_v4  ;;  %1762 = vmatmul.mubr.bf16.gmra.mrb[8].mxu1 %v3861_v5  ;;  %309 = vst [vmem:[#allocation2 + $0x111] sm:$0xff] %v3949_v19  ;;  %318 = vst [vmem:[#allocation2 + $0x181] sm:$0xff] %v246_v53 }
  0x8a   : > { %2924 = vmatpush3.bf16.msra.mxu1 %v3437_v6  ;;  %1673 = vmatprep.mubr.bf16.mxu0 %v3863_v7  ;;  %v453_v6 = vld [vmem:[#allocation2 + $0x3a] sm:$0xff] }
  0x8b   : > { %2925 = vmatprep.subr.bf16.mxu1 %v3438_v8  ;;  %1769 = vmatprep.mubr.bf16.mxu1 %v431_v9  ;;  %v3929_v8 = vld [vmem:[%s3820_s9 + $0x98] sm:$0xff]  ;;  %v332_v9 = vld [vmem:[#allocation2 + $0x90] sm:$0xff]  ;;  %v3939_v14 = vpack.c.bf16 %v453_v6, %v452_v3  ;;  %v339_v55 = vld [vmem:[#allocation2 + $0xe0] sm:$0xff] }
  0x8c   : > { %3035 = vmatprep.subr.bf16.mxu0 %v3450_v34  ;;  %307 = vst [vmem:[#allocation2 + $0xf9] sm:$0xff] %v3929_v8  ;;  %v3937_v13 = vpack.c.bf16 %v333_v10, %v332_v9  ;;  %v3467_v34 = vld [vmem:[#allocation7 + $0x1e8] sm:$0xff]  }
  0x8d   : > { %3036 = vmatpush3.bf16.msra.mxu0 %v3452_v37  ;;  %v336_v37 = vld [vmem:[#allocation2 + $0xc0] sm:$0xff] }
  0x8e   : > { %2926 = vmatpush3.bf16.msra.mxu1 %v3439_v12  ;;  %3037 = vmatprep.subr.bf16.mxu0 %v3454_v49  ;;  %v3461_v12 = vld [vmem:[#allocation7 + $0x198] sm:$0xff]   ;;  %v458_v49 = vld [vmem:[#allocation2 + $0x7a] sm:$0xff] }
  0x8f   : > { %2927 = vmatprep.subr.bf16.mxu1 %v3440_v16  ;;  %v3943_v16 = vpack.c.bf16 %v3891_v40, %v3888_v39  ;;  %v457_v39 = vld [vmem:[#allocation2 + $0x6a] sm:$0xff]  ;;  %v461_v6 = vld [vmem:[#allocation2 + $0x9a] sm:$0xff] }
  0x91   : > { %1674 = vmatmul.mubr.bf16.gmra.mrb[12].mxu0 %v3872_v22  ;;  %1770 = vmatmul.mubr.bf16.gmra.mrb[12].mxu1 %v3874_v23 }
  0x92   : > { %2928 = vmatpush3.bf16.msra.mxu1 %v3442_v25  ;;  %1681 = vmatprep.mubr.bf16.mxu0 %v3879_v26  ;;  %v455_v25 = vld [vmem:[#allocation2 + $0x52] sm:$0xff] }
  0x93   : > { %2929 = vmatprep.subr.bf16.mxu1 %v3444_v28  ;;  %1810 = vmatprep.mubr.bf16.mxu1 %v3846_v51  ;;  %v3903_v51 = vld [vmem:[%s3820_s9 + $0x78] sm:$0xff]  ;;  %v3957_v28 = vld [vmem:[#allocation7 + $0x200] sm:$0xff]   ;;  %v3962_v32 = vpack.c.bf16 %v455_v25, %v454_v24  ;;  %v341_v3 = vld [vmem:[#allocation2 + $0xf8] sm:$0xff] }
  0x94   : > { %303 = vst [vmem:[#allocation2 + $0xc9] sm:$0xff] %v3903_v51  ;;  %3038 = vmatpush3.bf16.msra.mxu0 %v3455_v54  ;;  %v3966_v33 = vpack.c.bf16 %v3903_v51, %v3900_v50  ;;  %v459_v50 = vld [vmem:[#allocation2 + $0x82] sm:$0xff]  ;;  %v338_v54 = vld [vmem:[#allocation2 + $0xd8] sm:$0xff] }
  0x95   : > { %3039 = vmatprep.subr.bf16.mxu0 %v3458_v0  ;;  %v3475_v51 = vld [vmem:[#allocation7 + $0x1b8] sm:$0xff]   ;;  %v3986_v58 = vpack.c.bf16 %v339_v55, %v338_v54  ;;  %v3988_v59 = vpack.c.bf16 %v459_v50, %v458_v49  ;;  %v460_v0 = vld [vmem:[#allocation2 + $0x92] sm:$0xff]  ;;  %v477_v55 = vld [vmem:[#allocation2 + $0x15a] sm:$0xff] }
  0x96   : > { %2930 = vmatpush3.bf16.msra.mxu1 %v3445_v29  ;;  %v3466_v29 = vld [vmem:[#allocation7 + $0x1a0] sm:$0xff]   ;;  %v4000_v10 = vpack.c.bf16 %v461_v6, %v460_v0  ;;  %v3468_v25 = vld [vmem:[#allocation7 + $0x208] sm:$0xff]  }
  0x97   : > { %3139 = vmatprep.subr.bf16.mxu1 %v3446_v38  ;;  %v456_v38 = vld [vmem:[#allocation2 + $0x62] sm:$0xff]  ;;  %v473_v49 = vld [vmem:[#allocation2 + $0x12a] sm:$0xff]  ;;  %v476_v54 = vld [vmem:[#allocation2 + $0x152] sm:$0xff] }
  0x98   : > { %3040 = vmatpush3.bf16.msra.mxu0 %v3459_v1  ;;  %v340_v1 = vld [vmem:[#allocation2 + $0xf0] sm:$0xff] }
  0x99   : > { %1682 = vmatmul.mubr.bf16.gmra.mrb[16].mxu0 %v3894_v41  ;;  %1811 = vmatmul.mubr.bf16.vlgmr.msra.gmra.mrb[16].mxu1 %v480_v42  ;;  %v3470_v42 = vld [vmem:[#allocation7 + $0x1f0] sm:$0xff]   ;;  %v3998_v9 = vpack.c.bf16 %v341_v3, %v340_v1  ;;  %v4057_v1 = vpack.c.bf16 %v477_v55, %v476_v54  ;;  %v478_v3 = vld [vmem:[#allocation2 + $0x16a] sm:$0xff] }
  0x9a   : > { %3140 = vmatpush3.bf16.msra.mxu1 %v3447_v43  ;;  %1689 = vmatprep.mubr.bf16.mxu0 %v3897_v44 }
  0x9b   : > { %1818 = vmatprep.mubr.bf16.mxu1 %v3859_v4  ;;  %3141 = vmatprep.subr.bf16.mxu1 %v3451_v45  ;;  %v337_v40 = vld [vmem:[#allocation2 + $0xc8] sm:$0xff]  ;;  %v3974_v45 = vpack.c.bf16 %v457_v39, %v456_v38  ;;  %v3477_v38 = vld [vmem:[#allocation7 + $0x228] sm:$0xff]  }
  0x9c   : > { %3041 = vmatprep.subr.bf16.mxu0 %v3462_v15  ;;  %v3972_v43 = vpack.c.bf16 %v337_v40, %v336_v37  ;;  %v463_v15 = vld [vmem:[#allocation2 + $0xb2] sm:$0xff]  ;;  %v470_v39 = vld [vmem:[#allocation2 + $0x10a] sm:$0xff] }
  0x9d   : > { %3042 = vmatpush3.bf16.msra.mxu0 %v3463_v17  ;;  %v471_v40 = vld [vmem:[#allocation2 + $0x112] sm:$0xff] }
  0x9e   : > { %3142 = vmatpush3.bf16.msra.mxu1 %v3453_v48  ;;  %3275 = vmatprep.subr.bf16.mxu0 %v3957_v28  ;;  %v3473_v48 = vld [vmem:[#allocation7 + $0x1f8] sm:$0xff]  }
  0x9f   : > { %3143 = vmatprep.subr.bf16.mxu1 %v3456_v57  ;;  %v247_v57 = vld [vmem:[%s3820_s9 + $0xf8] sm:$0xff] }
  0xa0   : > { %319 = vst [vmem:[#allocation2 + $0x189] sm:$0xff] %v247_v57  ;;  %v4014_v21 = vpack.c.bf16 %v247_v57, %v246_v53  ;;  %v475_v53 = vld [vmem:[#allocation2 + $0x142] sm:$0xff] }
  0xa1   : > { %1690 = vmatmul.mubr.bf16.gmra.mrb[20].mxu0 %v3916_v60  ;;  %1819 = vmatmul.mubr.bf16.gmra.mrb[20].mxu1 %v3918_v61  ;;  %v542_v57 = vld [vmem:[#allocation2 + $0x180] sm:$0xff] }
  0xa2   : > { %1697 = vmatprep.mubr.bf16.mxu0 %v3923_v63  ;;  %1826 = vmatprep.mubr.bf16.mxu1 %v3872_v22 }
  0xa3   : > { %3144 = vmatpush3.bf16.msra.mxu1 %v3457_v62  ;;  %v3992_v62 = vpack.c.bf16 %v3929_v8, %v3926_v2  ;;  %v4004_v2 = vpack.c.bf16 %v3949_v19, %v3946_v18  ;;  %v462_v8 = vld [vmem:[#allocation2 + $0xaa] sm:$0xff]  ;;  %v464_v18 = vld [vmem:[#allocation2 + $0xc2] sm:$0xff] }
  0xa4   : > { %3145 = vmatprep.subr.bf16.mxu1 %v3460_v11  ;;  %v342_v11 = vld [vmem:[#allocation2 + $0x108] sm:$0xff]  ;;  %v4012_v20 = vpack.c.bf16 %v463_v15, %v462_v8 }
  0xa5   : > { %v465_v19 = vld [vmem:[#allocation2 + $0xca] sm:$0xff] }
  0xa6   : > { %v4020_v24 = vpack.c.bf16 %v465_v19, %v464_v18 }
  0xa7   : > { %3146 = vmatpush3.bf16.msra.mxu1 %v3461_v12  ;;  %v343_v12 = vld [vmem:[#allocation2 + $0x110] sm:$0xff]  ;;  %v543_v0 = vld [vmem:[#allocation2 + $0x188] sm:$0xff] }
  0xa8   : > { %3147 = vmatprep.subr.bf16.mxu1 %v3464_v27  ;;  %v4010_v17 = vpack.c.bf16 %v343_v12, %v342_v11  ;;  %v466_v27 = vld [vmem:[#allocation2 + $0xda] sm:$0xff]  ;;  %v670_v12 = vld [vmem:[#allocation2 + $0x182] sm:$0xff] }
  0xa9   : > { %1698 = vmatmul.mubr.bf16.gmra.mrb[24].mxu0 %v3937_v13  ;;  %1827 = vmatmul.mubr.bf16.gmra.mrb[24].mxu1 %v3939_v14 }
  0xaa   : > { %1705 = vmatprep.mubr.bf16.mxu0 %v3943_v16  ;;  %1834 = vmatprep.mubr.bf16.mxu1 %v3894_v41 }
  0xab   : > { %3148 = vmatpush3.bf16.msra.mxu1 %v3466_v29  ;;  %v467_v29 = vld [vmem:[#allocation2 + $0xe2] sm:$0xff] }
  0xac   : > { %3149 = vmatprep.subr.bf16.mxu1 %v3467_v34  ;;  %v3471_v34 = vld [vmem:[#allocation7 + $0x210] sm:$0xff]  }
  0xaf   : > { %3150 = vmatpush3.bf16.msra.mxu1 %v3469_v36  ;;  %v3474_v36 = vld [vmem:[#allocation7 + $0x218] sm:$0xff]  }
  0xb0   : > { %3151 = vmatprep.subr.bf16.mxu1 %v3470_v42  ;;  %v3478_v42 = vld [vmem:[#allocation7 + $0x230] sm:$0xff]  }
  0xb1   : > { %1706 = vmatmul.mubr.bf16.gmra.mrb[28].mxu0 %v3960_v30  ;;  %1835 = vmatmul.mubr.bf16.gmra.mrb[28].mxu1 %v3962_v32 }
  0xb2   : > { %1713 = vmatprep.mubr.bf16.mxu0 %v3966_v33  ;;  %1842 = vmatprep.mubr.bf16.mxu1 %v3916_v60 }
  0xb3   : > { %3152 = vmatpush3.bf16.msra.mxu1 %v3472_v46  ;;  %v4039_v46 = vpack.c.bf16 %v471_v40, %v470_v39 }
  0xb4   : > { %3153 = vmatprep.subr.bf16.mxu1 %v3473_v48  ;;  %v3479_v48 = vld [vmem:[#allocation7 + $0x238] sm:$0xff]  }
  0xb7   : > { %3154 = vmatpush3.bf16.msra.mxu1 %v3475_v51  ;;  %v474_v51 = vld [vmem:[#allocation2 + $0x13a] sm:$0xff] }
  0xb9   : > { %1714 = vmatmul.mubr.bf16.gmra.mrb[32].mxu0 %v3972_v43  ;;  %1843 = vmatmul.mubr.bf16.gmra.mrb[32].mxu1 %v3974_v45 }
  0xba   : > { %1721 = vmatprep.mubr.bf16.mxu0 %v3978_v47  ;;  %1850 = vmatprep.mubr.bf16.mxu1 %v3937_v13 }
  0xc1   : > { %1722 = vmatmul.mubr.bf16.gmra.mrb[36].mxu0 %v3986_v58  ;;  %1851 = vmatmul.mubr.bf16.gmra.mrb[36].mxu1 %v3988_v59 }
  0xc2   : > { %1729 = vmatprep.mubr.bf16.mxu0 %v3992_v62  ;;  %1858 = vmatprep.mubr.bf16.mxu1 %v3960_v30 }
  0xc9   : > { %1730 = vmatmul.mubr.bf16.gmra.mrb[40].mxu0 %v3998_v9  ;;  %1859 = vmatmul.mubr.bf16.gmra.mrb[40].mxu1 %v4000_v10 }
  0xca   : > { %1737 = vmatprep.mubr.bf16.mxu0 %v4004_v2  ;;  %1866 = vmatprep.mubr.bf16.mxu1 %v3972_v43 }
  0xd1   : > { %1738 = vmatmul.mubr.bf16.gmra.mrb[44].mxu0 %v4010_v17  ;;  %1867 = vmatmul.mubr.bf16.gmra.mrb[44].mxu1 %v4012_v20 }
  0xd2   : > { %1874 = vmatprep.mubr.bf16.mxu1 %v3986_v58  ;;  %1971 = vmatprep.mubr.bf16.mxu0 %v3918_v61  ;;  %v4027_v61 = vpack.c.bf16 %v467_v29, %v466_v27 }
  0xd9   : > { %1875 = vmatmul.mubr.bf16.gmra.mrb[48].mxu1 %v4020_v24  ;;  %1972 = vmatmul.mubr.bf16.vlgmr.msra.gmra.mrb[48].mxu0 %v3838_v35  ;;  %v468_v35 = vld [vmem:[#allocation2 + $0xf2] sm:$0xff] }
  0xda   : > { %3276 = vmatpush3.bf16.msra.mxu0 %v3957_v28  ;;  %1882 = vmatprep.mubr.bf16.mxu1 %v3998_v9  ;;  %v469_v28 = vld [vmem:[#allocation2 + $0xfa] sm:$0xff] }
  0xdb   : > { %1979 = vmatprep.mubr.bf16.mxu0 %v3939_v14  ;;  %3277 = vmatprep.subr.bf16.mxu0 %v3468_v25  ;;  %v3476_v14 = vld [vmem:[#allocation7 + $0x220] sm:$0xff]   ;;  %v4033_v37 = vpack.c.bf16 %v469_v28, %v468_v35 }
  0xde   : > { %3278 = vmatpush3.bf16.msra.mxu0 %v3468_v25 }
  0xdf   : > { %3279 = vmatprep.subr.bf16.mxu0 %v3471_v34 }
  0xe1   : > { %1883 = vmatmul.mubr.bf16.gmra.mrb[52].mxu1 %v4027_v61  ;;  %1980 = vmatmul.mubr.bf16.gmra.mrb[52].mxu0 %v3853_v56 }
  0xe2   : > { %1890 = vmatprep.mubr.bf16.mxu1 %v4010_v17  ;;  %1987 = vmatprep.mubr.bf16.mxu0 %v3962_v32 }
  0xe3   : > { %3280 = vmatpush3.bf16.msra.mxu0 %v3471_v34 }
  0xe4   : > { %3281 = vmatprep.subr.bf16.mxu0 %v3474_v36 }
  0xe7   : > { %3282 = vmatpush3.bf16.msra.mxu0 %v3474_v36 }
  0xe8   : > { %3283 = vmatprep.subr.bf16.mxu0 %v3476_v14 }
  0xe9   : > { %1891 = vmatmul.mubr.bf16.gmra.mrb[56].mxu1 %v4033_v37  ;;  %1988 = vmatmul.mubr.bf16.gmra.mrb[56].mxu0 %v3863_v7 }
  0xea   : > { %1898 = vmatprep.mubr.bf16.mxu1 %v3836_v31  ;;  %1995 = vmatprep.mubr.bf16.mxu0 %v3974_v45  ;;  %v472_v31 = vld [vmem:[#allocation2 + $0x122] sm:$0xff] }
  0xeb   : > { %3284 = vmatpush3.bf16.msra.mxu0 %v3476_v14  ;;  %v4045_v50 = vpack.c.bf16 %v473_v49, %v472_v31 }
  0xec   : > { %3285 = vmatprep.subr.bf16.mxu0 %v3477_v38 }
  0xef   : > { %3286 = vmatpush3.bf16.msra.mxu0 %v3477_v38 }
  0xf0   : > { %3287 = vmatprep.subr.bf16.mxu0 %v3478_v42 }
  0xf1   : > { %1899 = vmatmul.mubr.bf16.gmra.mrb[60].mxu1 %v4039_v46  ;;  %1996 = vmatmul.mubr.bf16.gmra.mrb[60].mxu0 %v3879_v26 }
  0xf2   : > { %1906 = vmatprep.mubr.bf16.mxu1 %v3848_v52  ;;  %2003 = vmatprep.mubr.bf16.mxu0 %v3988_v59  ;;  %v4051_v52 = vpack.c.bf16 %v475_v53, %v474_v51 }
  0xf3   : > { %3288 = vmatpush3.bf16.msra.mxu0 %v3478_v42 }
  0xf4   : > { %3289 = vmatprep.subr.bf16.mxu0 %v3479_v48 }
  0xf7   : > { %3290 = vmatpush3.bf16.msra.mxu0 %v3479_v48 }
  0xf9   : > { %1907 = vmatmul.mubr.bf16.gmra.mrb[64].mxu1 %v4045_v50  ;;  %2004 = vmatmul.mubr.bf16.gmra.mrb[64].mxu0 %v3897_v44 }
  0xfa   : > { %1914 = vmatprep.mubr.bf16.mxu1 %v3861_v5  ;;  %2011 = vmatprep.mubr.bf16.mxu0 %v4000_v10  ;;  %v4059_v5 = vpack.c.bf16 %v543_v0, %v542_v57 }
 0x101   : > { %1915 = vmatmul.mubr.bf16.gmra.mrb[68].mxu1 %v4051_v52  ;;  %2012 = vmatmul.mubr.bf16.gmra.mrb[68].mxu0 %v3923_v63 }
 0x102   : > { %1922 = vmatprep.mubr.bf16.mxu1 %v3874_v23  ;;  %2019 = vmatprep.mubr.bf16.mxu0 %v4012_v20  ;;  %v479_v23 = vld [vmem:[#allocation2 + $0x172] sm:$0xff] }
 0x103   : > { %v4065_v6 = vpack.c.bf16 %v479_v23, %v478_v3 }
 0x109   : > { %1923 = vmatmul.mubr.bf16.gmra.mrb[72].mxu1 %v4057_v1  ;;  %2020 = vmatmul.mubr.bf16.gmra.mrb[72].mxu0 %v3943_v16 }
 0x10a   : > { %1930 = vmatprep.mubr.bf16.mxu1 %v4059_v5  ;;  %2027 = vmatprep.mubr.bf16.mxu0 %v4020_v24 }
 0x111   : > { %1931 = vmatmul.mubr.bf16.gmra.mrb[76].mxu1 %v4065_v6  ;;  %2028 = vmatmul.mubr.bf16.gmra.mrb[76].mxu0 %v3966_v33 }
 0x112   : > { %2035 = vmatprep.mubr.bf16.mxu0 %v4027_v61  ;;  %2132 = vmatprep.mubr.bf16.mxu1 %v3853_v56  ;;  %v598_v56 = vld [vmem:[#allocation2 + $0x121] sm:$0xff] }
 0x119   : > { %2036 = vmatmul.mubr.bf16.gmra.mrb[80].mxu0 %v3978_v47  ;;  %2133 = vmatmul.mubr.bf16.vlgmr.msra.gmra.mrb[80].mxu1 %v3859_v4  ;;  %v599_v4 = vld [vmem:[#allocation2 + $0x129] sm:$0xff] }
 0x11a   : > { %2043 = vmatprep.mubr.bf16.mxu0 %v4033_v37  ;;  %2140 = vmatprep.mubr.bf16.mxu1 %v3863_v7  ;;  %v4083_v8 = vpack.c.bf16 %v599_v4, %v598_v56  ;;  %v600_v7 = vld [vmem:[#allocation2 + $0x139] sm:$0xff] }
 0x121   : > { %2044 = vmatmul.mubr.bf16.gmra.mrb[84].mxu0 %v3992_v62  ;;  %2141 = vmatmul.mubr.bf16.gmra.mrb[84].mxu1 %v3872_v22  ;;  %v601_v22 = vld [vmem:[#allocation2 + $0x141] sm:$0xff] }
 0x122   : > { %2051 = vmatprep.mubr.bf16.mxu0 %v4039_v46  ;;  %2148 = vmatprep.mubr.bf16.mxu1 %v3879_v26  ;;  %v4089_v26 = vpack.c.bf16 %v601_v22, %v600_v7 }
 0x129   : > { %2052 = vmatmul.mubr.bf16.gmra.mrb[88].mxu0 %v4004_v2  ;;  %2149 = vmatmul.mubr.bf16.gmra.mrb[88].mxu1 %v3894_v41  ;;  %v602_v41 = vld [vmem:[#allocation2 + $0x151] sm:$0xff] }
 0x12a   : > { %2059 = vmatprep.mubr.bf16.mxu0 %v4045_v50  ;;  %2156 = vmatprep.mubr.bf16.mxu1 %v3897_v44  ;;  %v603_v44 = vld [vmem:[#allocation2 + $0x159] sm:$0xff] }
 0x12b   : > { %v4095_v11 = vpack.c.bf16 %v603_v44, %v602_v41 }
 0x131   : > { %2060 = vmatmul.mubr.bf16.gmra.mrb[92].mxu0 %v4083_v8  ;;  %2157 = vmatmul.mubr.bf16.gmra.mrb[92].mxu1 %v3916_v60  ;;  %v604_v60 = vld [vmem:[#allocation2 + $0x169] sm:$0xff] }
 0x132   : > { %2067 = vmatprep.mubr.bf16.mxu0 %v4051_v52  ;;  %2164 = vmatprep.mubr.bf16.mxu1 %v3923_v63  ;;  %v605_v63 = vld [vmem:[#allocation2 + $0x171] sm:$0xff] }
 0x133   : > { %v4101_v15 = vpack.c.bf16 %v605_v63, %v604_v60 }
 0x139   : > { %2068 = vmatmul.mubr.bf16.gmra.mrb[96].mxu0 %v4089_v26  ;;  %2165 = vmatmul.mubr.bf16.gmra.mrb[96].mxu1 %v3937_v13  ;;  %v671_v13 = vld [vmem:[#allocation2 + $0x18a] sm:$0xff] }
 0x13a   : > { %2075 = vmatprep.mubr.bf16.mxu0 %v4057_v1  ;;  %2172 = vmatprep.mubr.bf16.mxu1 %v3943_v16  ;;  %v4103_v18 = vpack.c.bf16 %v671_v13, %v670_v12  ;;  %v833_v16 = vld [vmem:[#allocation2 + $0x32] sm:$0xff] }
 0x141   : > { %2076 = vmatmul.mubr.bf16.gmra.mrb[100].mxu0 %v4095_v11  ;;  %2173 = vmatmul.mubr.bf16.gmra.mrb[100].mxu1 %v3960_v30  ;;  %v834_v30 = vld [vmem:[#allocation2 + $0x3a] sm:$0xff] }
 0x142   : > { %2083 = vmatprep.mubr.bf16.mxu0 %v4065_v6  ;;  %2180 = vmatprep.mubr.bf16.mxu1 %v3966_v33  ;;  %v865_v28 = vpack.c.bf16 %v834_v30, %v833_v16 }
 0x149   : > { %2084 = vmatmul.mubr.bf16.gmra.mrb[104].mxu0 %v4101_v15  ;;  %2181 = vmatmul.mubr.bf16.gmra.mrb[104].mxu1 %v3972_v43 }
 0x14a   : > { %2091 = vmatprep.mubr.bf16.mxu0 %v4103_v18  ;;  %2188 = vmatprep.mubr.bf16.mxu1 %v3978_v47 }
 0x14c   : > { %v2819_v19 = vpop.f32.mrb[0].mxu0  ;;  %v2891_v33 = vpop.f32.mrb[0].mxu1 }
 0x14d   : > { %v2820_v25 = vpop.f32.mrb[1].mxu0  ;;  %v2892_v27 = vpop.f32.mrb[1].mxu1 }
 0x14e   : > { %v4109_v29 = vadd.f32 %v2820_v25, %v2819_v19  ;;  %v4111_v34 = vadd.f32 %v2892_v27, %v2891_v33  ;;  %v2822_v36 = vpop.f32.mrb[2].mxu0  ;;  %v2894_v35 = vpop.f32.mrb[2].mxu1 }
 0x14f   : > { %v2823_v14 = vpop.f32.mrb[3].mxu0  ;;  %v2895_v38 = vpop.f32.mrb[3].mxu1 }
 0x150   : > { %v4113_v43 = vadd.f32 %v2823_v14, %v2822_v36  ;;  %v4115_v39 = vadd.f32 %v2895_v38, %v2894_v35  ;;  %v728_v36 = vld [vmem:[#allocation2 + $0x140] sm:$0xff] }
 0x151   : > { %2092 = vmatmul.mubr.bf16.gmra.mrb[108].mxu0 %v4014_v21  ;;  %2189 = vmatmul.mubr.bf16.gmra.mrb[108].mxu1 %v3986_v58 }
 0x152   : > { %2196 = vmatprep.mubr.bf16.mxu1 %v3992_v62  ;;  %3291 = vmatprep.mubr.bf16.mxu0 %v865_v28 }
 0x154   : > { %v2825_v47 = vpop.f32.mrb[4].mxu0  ;;  %v2897_v40 = vpop.f32.mrb[4].mxu1 }
 0x155   : > { %v2826_v42 = vpop.f32.mrb[5].mxu0  ;;  %v2898_v48 = vpop.f32.mrb[5].mxu1 }
 0x156   : > { %v4120_v31 = vadd.f32 %v2826_v42, %v2825_v47  ;;  %v4122_v49 = vadd.f32 %v2898_v48, %v2897_v40  ;;  %v2828_v51 = vpop.f32.mrb[6].mxu0  ;;  %v2900_v53 = vpop.f32.mrb[6].mxu1 }
 0x157   : > { %v2829_v54 = vpop.f32.mrb[7].mxu0  ;;  %v2901_v55 = vpop.f32.mrb[7].mxu1 }
 0x158   : > { %v4124_v57 = vadd.f32 %v2829_v54, %v2828_v51  ;;  %v4126_v0 = vadd.f32 %v2901_v55, %v2900_v53 }
 0x159   : > { %2197 = vmatmul.mubr.bf16.gmra.mrb[112].mxu1 %v3998_v9  ;;  %3292 = vmatmul.mubr.bf16.vlgmr.msra.gmra.mrb[112].mxu0 %v3962_v32  ;;  %v725_v32 = vld [vmem:[#allocation2 + $0x120] sm:$0xff] }
 0x15a   : > { %2204 = vmatprep.mubr.bf16.mxu1 %v4004_v2  ;;  %3295 = vmatprep.mubr.bf16.mxu0 %v3974_v45  ;;  %v726_v45 = vld [vmem:[#allocation2 + $0x128] sm:$0xff] }
 0x15b   : > { %v747_v16 = vpack.c.bf16 %v726_v45, %v725_v32 }
 0x15c   : > { %v2831_v58 = vpop.f32.mrb[8].mxu0  ;;  %v2903_v62 = vpop.f32.mrb[8].mxu1 }
 0x15d   : > { %v2832_v3 = vpop.f32.mrb[9].mxu0  ;;  %v2904_v23 = vpop.f32.mrb[9].mxu1 }
 0x15e   : > { %v4132_v56 = vadd.f32 %v2832_v3, %v2831_v58  ;;  %v4134_v4 = vadd.f32 %v2904_v23, %v2903_v62  ;;  %v2834_v7 = vpop.f32.mrb[10].mxu0  ;;  %v2906_v22 = vpop.f32.mrb[10].mxu1  ;;  %v729_v58 = vld [vmem:[#allocation2 + $0x150] sm:$0xff]  ;;  %v730_v62 = vld [vmem:[#allocation2 + $0x158] sm:$0xff] }
 0x15f   : > { %v2835_v41 = vpop.f32.mrb[11].mxu0  ;;  %v2907_v44 = vpop.f32.mrb[11].mxu1 }
 0x160   : > { %v4136_v60 = vadd.f32 %v2835_v41, %v2834_v7  ;;  %v4138_v9 = vadd.f32 %v2907_v44, %v2906_v22  ;;  %v749_v22 = vpack.c.bf16 %v730_v62, %v729_v58 }
 0x161   : > { %2205 = vmatmul.mubr.bf16.gmra.mrb[116].mxu1 %v4010_v17  ;;  %3296 = vmatmul.mubr.bf16.gmra.mrb[116].mxu0 %v3988_v59 }
 0x162   : > { %2212 = vmatprep.mubr.bf16.mxu1 %v4083_v8  ;;  %3299 = vmatprep.mubr.bf16.mxu0 %v4000_v10  ;;  %v727_v10 = vld [vmem:[#allocation2 + $0x138] sm:$0xff] }
 0x163   : > { %v748_v47 = vpack.c.bf16 %v728_v36, %v727_v10 }
 0x164   : > { %v2837_v2 = vpop.f32.mrb[12].mxu0  ;;  %v2909_v63 = vpop.f32.mrb[12].mxu1 }
 0x165   : > { %v2838_v12 = vpop.f32.mrb[13].mxu0  ;;  %v2910_v13 = vpop.f32.mrb[13].mxu1 }
 0x166   : > { %v4144_v30 = vadd.f32 %v2838_v12, %v2837_v2  ;;  %v4146_v19 = vadd.f32 %v2910_v13, %v2909_v63  ;;  %v2840_v33 = vpop.f32.mrb[14].mxu0  ;;  %v2912_v25 = vpop.f32.mrb[14].mxu1  ;;  %v731_v12 = vld [vmem:[#allocation2 + $0x168] sm:$0xff]  ;;  %v732_v13 = vld [vmem:[#allocation2 + $0x170] sm:$0xff] }
 0x167   : > { %v2841_v17 = vpop.f32.mrb[15].mxu0  ;;  %v2913_v27 = vpop.f32.mrb[15].mxu1 }
 0x168   : > { %v4148_v59 = vadd.f32 %v2841_v17, %v2840_v33  ;;  %v4150_v8 = vadd.f32 %v2913_v27, %v2912_v25  ;;  %v750_v17 = vpack.c.bf16 %v732_v13, %v731_v12 }
 0x169   : > { %2213 = vmatmul.mubr.bf16.gmra.mrb[120].mxu1 %v747_v16  ;;  %3300 = vmatmul.mubr.bf16.gmra.mrb[120].mxu0 %v4012_v20 }
 0x16a   : > { %2220 = vmatprep.mubr.bf16.mxu1 %v4089_v26  ;;  %3303 = vmatprep.mubr.bf16.mxu0 %v4020_v24 }
 0x16c   : > { %v2843_v35 = vpop.f32.mrb[16].mxu0  ;;  %v2931_v28 = vpop.f32.mrb[16].mxu1 }
 0x16d   : > { %v2844_v14 = vpop.f32.mrb[17].mxu0  ;;  %v2932_v38 = vpop.f32.mrb[17].mxu1 }
 0x16e   : > { %v4155_v40 = vadd.f32 %v2844_v14, %v2843_v35  ;;  %v2933_v42 = vadd.f32 %v2932_v38, %v2931_v28  ;;  %v2846_v48 = vpop.f32.mrb[18].mxu0  ;;  %v2934_v51 = vpop.f32.mrb[18].mxu1  ;;  %v799_v38 = vld [vmem:[#allocation2 + $0x199] sm:$0xff] }
 0x16f   : > { %v2847_v53 = vpop.f32.mrb[19].mxu0  ;;  %v2935_v54 = vpop.f32.mrb[19].mxu1 }
 0x170   : > { %v4158_v20 = vadd.f32 %v2933_v42, %v4109_v29  ;;  %v4160_v26 = vadd.f32 %v2847_v53, %v2846_v48  ;;  %v2936_v24 = vadd.f32 %v2935_v54, %v2934_v51 }
 0x171   : > { %2221 = vmatmul.mubr.bf16.gmra.mrb[124].mxu1 %v748_v47  ;;  %3304 = vmatmul.mubr.bf16.gmra.mrb[124].mxu0 %v4027_v61  ;;  %v800_v47 = vld [vmem:[#allocation2 + $0x1a1] sm:$0xff] }
 0x172   : > { %v4164_v55 = vadd.f32 %v2936_v24, %v4113_v43  ;;  %2228 = vmatprep.mubr.bf16.mxu1 %v4095_v11  ;;  %3307 = vmatprep.mubr.bf16.mxu0 %v4033_v37  ;;  %v816_v62 = vpack.c.bf16 %v800_v47, %v799_v38 }
 0x174   : > { %v2849_v3 = vpop.f32.mrb[20].mxu0  ;;  %v2937_v23 = vpop.f32.mrb[20].mxu1 }
 0x175   : > { %v2850_v7 = vpop.f32.mrb[21].mxu0  ;;  %v2938_v29 = vpop.f32.mrb[21].mxu1 }
 0x176   : > { %v4168_v41 = vadd.f32 %v2850_v7, %v2849_v3  ;;  %v2939_v44 = vadd.f32 %v2938_v29, %v2937_v23  ;;  %v2852_v32 = vpop.f32.mrb[22].mxu0  ;;  %v2940_v45 = vpop.f32.mrb[22].mxu1  ;;  %v863_v7 = vld [vmem:[#allocation2 + $0x19a] sm:$0xff]  ;;  %v864_v29 = vld [vmem:[#allocation2 + $0x1a2] sm:$0xff] }
 0x177   : > { %v2853_v61 = vpop.f32.mrb[23].mxu0  ;;  %v2941_v2 = vpop.f32.mrb[23].mxu1 }
 0x178   : > { %v4171_v43 = vadd.f32 %v2939_v44, %v4120_v31  ;;  %v4173_v11 = vadd.f32 %v2853_v61, %v2852_v32  ;;  %v2942_v37 = vadd.f32 %v2941_v2, %v2940_v45  ;;  %v3480_v45 = vld [vmem:[#allocation2] sm:$0xff]  ;;  %v880_v2 = vpack.c.bf16 %v864_v29, %v863_v7 }
 0x179   : > { %2229 = vmatmul.mubr.bf16.gmra.mrb[128].mxu1 %v749_v22  ;;  %3308 = vmatmul.mubr.bf16.gmra.mrb[128].mxu0 %v4039_v46  ;;  %v752_v61 = vpack.c.bf16 %v3480_v45, %v3480_v45 }
 0x17a   : > { %v4177_v63 = vadd.f32 %v2942_v37, %v4124_v57  ;;  %2236 = vmatprep.mubr.bf16.mxu1 %v4101_v15  ;;  %3311 = vmatprep.mubr.bf16.mxu0 %v4045_v50 }
 0x17c   : > { %v2855_v16 = vpop.f32.mrb[24].mxu0  ;;  %v2943_v33 = vpop.f32.mrb[24].mxu1 }
 0x17d   : > { %v2856_v25 = vpop.f32.mrb[25].mxu0  ;;  %v2944_v31 = vpop.f32.mrb[25].mxu1 }
 0x17e   : > { %v4181_v27 = vadd.f32 %v2856_v25, %v2855_v16  ;;  %v2945_v10 = vadd.f32 %v2944_v31, %v2943_v33  ;;  %v2858_v36 = vpop.f32.mrb[26].mxu0  ;;  %v2946_v35 = vpop.f32.mrb[26].mxu1 }
 0x17f   : > { %v2859_v46 = vpop.f32.mrb[27].mxu0  ;;  %v2947_v28 = vpop.f32.mrb[27].mxu1 }
 0x180   : > { %v4184_v57 = vadd.f32 %v2945_v10, %v4132_v56  ;;  %v4186_v15 = vadd.f32 %v2859_v46, %v2858_v36  ;;  %v2948_v50 = vadd.f32 %v2947_v28, %v2946_v35 }
 0x181   : > { %2237 = vmatmul.mubr.bf16.gmra.mrb[132].mxu1 %v750_v17  ;;  %3312 = vmatmul.mubr.bf16.gmra.mrb[132].mxu0 %v4051_v52 }
 0x182   : > { %v4190_v14 = vadd.f32 %v2948_v50, %v4136_v60  ;;  %2244 = vmatprep.mubr.bf16.mxu1 %v4014_v21  ;;  %3315 = vmatprep.mubr.bf16.mxu0 %v4057_v1 }
 0x184   : > { %v2861_v42 = vpop.f32.mrb[28].mxu0  ;;  %v2949_v48 = vpop.f32.mrb[28].mxu1 }
 0x185   : > { %v2862_v51 = vpop.f32.mrb[29].mxu0  ;;  %v2950_v56 = vpop.f32.mrb[29].mxu1 }
 0x186   : > { %v4194_v53 = vadd.f32 %v2862_v51, %v2861_v42  ;;  %v2951_v54 = vadd.f32 %v2950_v56, %v2949_v48  ;;  %v2864_v24 = vpop.f32.mrb[30].mxu0  ;;  %v2952_v58 = vpop.f32.mrb[30].mxu1 }
 0x187   : > { %v2865_v52 = vpop.f32.mrb[31].mxu0  ;;  %v2953_v3 = vpop.f32.mrb[31].mxu1 }
 0x188   : > { %v4197_v60 = vadd.f32 %v2951_v54, %v4144_v30  ;;  %v4199_v21 = vadd.f32 %v2865_v52, %v2864_v24  ;;  %v2954_v1 = vadd.f32 %v2953_v3, %v2952_v58 }
 0x189   : > { %2245 = vmatmul.mubr.bf16.gmra.mrb[136].mxu1 %v4059_v5  ;;  %3316 = vmatmul.mubr.bf16.gmra.mrb[136].mxu0 %v4065_v6 }
 0x18a   : > { %v4204_v23 = vadd.f32 %v2954_v1, %v4148_v59  ;;  %2252 = vmatprep.mubr.bf16.mxu1 %v816_v62  ;;  %3319 = vmatprep.mubr.bf16.mxu0 %v4103_v18 }
 0x18c   : > { %v2867_v22 = vpop.f32.mrb[32].mxu0  ;;  %v2955_v44 = vpop.f32.mrb[32].mxu1 }
 0x18d   : > { %v2868_v32 = vpop.f32.mrb[33].mxu0  ;;  %v2956_v30 = vpop.f32.mrb[33].mxu1 }
 0x18e   : > { %v4207_v37 = vadd.f32 %v2868_v32, %v2867_v22  ;;  %v2957_v5 = vadd.f32 %v2956_v30, %v2955_v44  ;;  %v2870_v12 = vpop.f32.mrb[34].mxu0  ;;  %v2958_v6 = vpop.f32.mrb[34].mxu1 }
 0x18f   : > { %v2871_v13 = vpop.f32.mrb[35].mxu0  ;;  %v2959_v59 = vpop.f32.mrb[35].mxu1 }
 0x190   : > { %v4210_v16 = vadd.f32 %v2957_v5, %v4155_v40  ;;  %v2872_v18 = vadd.f32 %v2871_v13, %v2870_v12  ;;  %v2960_v33 = vadd.f32 %v2959_v59, %v2958_v6 }
 0x191   : > { %2253 = vmatmul.mubr.bf16.gmra.mrb[140].mxu1 %v752_v61  ;;  %3320 = vmatmul.mubr.bf16.gmra.mrb[140].mxu0 %v880_v2 }
 0x192   : > { %v4213_v25 = vadd.f32 %v2960_v33, %v4160_v26 }
 0x194   : > { %v2873_v31 = vpop.f32.mrb[36].mxu0  ;;  %v2961_v17 = vpop.f32.mrb[36].mxu1 }
 0x195   : > { %v2874_v10 = vpop.f32.mrb[37].mxu0  ;;  %v2962_v36 = vpop.f32.mrb[37].mxu1 }
 0x196   : > { %v4215_v35 = vadd.f32 %v2874_v10, %v2873_v31  ;;  %v2963_v46 = vadd.f32 %v2962_v36, %v2961_v17  ;;  %v2876_v28 = vpop.f32.mrb[38].mxu0  ;;  %v2964_v50 = vpop.f32.mrb[38].mxu1 }
 0x197   : > { %v2877_v38 = vpop.f32.mrb[39].mxu0  ;;  %v2965_v47 = vpop.f32.mrb[39].mxu1 }
 0x198   : > { %v4218_v40 = vadd.f32 %v2963_v46, %v4168_v41  ;;  %v2878_v42 = vadd.f32 %v2877_v38, %v2876_v28  ;;  %v2966_v48 = vadd.f32 %v2965_v47, %v2964_v50 }
 0x19a   : > { %v4221_v51 = vadd.f32 %v2966_v48, %v4173_v11 }
 0x19c   : > { %v2879_v26 = vpop.f32.mrb[40].mxu0  ;;  %v2967_v56 = vpop.f32.mrb[40].mxu1 }
 0x19d   : > { %v2880_v54 = vpop.f32.mrb[41].mxu0  ;;  %v2968_v24 = vpop.f32.mrb[41].mxu1 }
 0x19e   : > { %v4223_v58 = vadd.f32 %v2880_v54, %v2879_v26  ;;  %v2969_v62 = vadd.f32 %v2968_v24, %v2967_v56  ;;  %v2882_v52 = vpop.f32.mrb[42].mxu0  ;;  %v2970_v3 = vpop.f32.mrb[42].mxu1 }
 0x19f   : > { %v2883_v1 = vpop.f32.mrb[43].mxu0  ;;  %v2971_v7 = vpop.f32.mrb[43].mxu1 }
 0x1a0   : > { %v4226_v29 = vadd.f32 %v2969_v62, %v4181_v27  ;;  %v4228_v41 = vadd.f32 %v2883_v1, %v2882_v52  ;;  %v2972_v22 = vadd.f32 %v2971_v7, %v2970_v3 }
 0x1a2   : > { %v4231_v11 = vadd.f32 %v2972_v22, %v4186_v15 }
 0x1a4   : > { %v2885_v44 = vpop.f32.mrb[44].mxu0  ;;  %v2973_v32 = vpop.f32.mrb[44].mxu1 }
 0x1a5   : > { %v2886_v30 = vpop.f32.mrb[45].mxu0  ;;  %v2974_v45 = vpop.f32.mrb[45].mxu1 }
 0x1a6   : > { %v4233_v61 = vadd.f32 %v2886_v30, %v2885_v44  ;;  %v2975_v2 = vadd.f32 %v2974_v45, %v2973_v32  ;;  %v2888_v5 = vpop.f32.mrb[46].mxu0  ;;  %v2976_v12 = vpop.f32.mrb[46].mxu1 }
 0x1a7   : > { %v2889_v6 = vpop.f32.mrb[47].mxu0  ;;  %v2977_v13 = vpop.f32.mrb[47].mxu1 }
 0x1a8   : > { %v4236_v27 = vadd.f32 %v2975_v2, %v4194_v53  ;;  %v4238_v59 = vadd.f32 %v2889_v6, %v2888_v5  ;;  %v2978_v33 = vadd.f32 %v2977_v13, %v2976_v12 }
 0x1aa   : > { %v4241_v15 = vadd.f32 %v2978_v33, %v4199_v21 }
 0x1ac   : > { %v2979_v31 = vpop.f32.mrb[48].mxu1  ;;  %v3043_v17 = vpop.f32.mrb[48].mxu0 }
 0x1ad   : > { %v2980_v10 = vpop.f32.mrb[49].mxu1  ;;  %v3044_v36 = vpop.f32.mrb[49].mxu0 }
 0x1ae   : > { %v2981_v46 = vadd.f32 %v2980_v10, %v2979_v31  ;;  %v3045_v28 = vadd.f32 %v3044_v36, %v3043_v17  ;;  %v2982_v50 = vpop.f32.mrb[50].mxu1  ;;  %v3046_v38 = vpop.f32.mrb[50].mxu0 }
 0x1af   : > { %v2983_v47 = vpop.f32.mrb[51].mxu1  ;;  %v3047_v48 = vpop.f32.mrb[51].mxu0 }
 0x1b0   : > { %v4244_v26 = vadd.f32 %v2981_v46, %v4207_v37  ;;  %v4247_v53 = vadd.f32 %v3045_v28, %v4158_v20  ;;  %v2984_v56 = vadd.f32 %v2983_v47, %v2982_v50  ;;  %v3048_v54 = vadd.f32 %v3047_v48, %v3046_v38 }
 0x1b2   : > { %v4249_v21 = vadd.f32 %v2984_v56, %v2872_v18  ;;  %v4252_v24 = vadd.f32 %v3048_v54, %v4164_v55 }
 0x1b4   : > { %v2985_v62 = vpop.f32.mrb[52].mxu1  ;;  %v3049_v52 = vpop.f32.mrb[52].mxu0 }
 0x1b5   : > { %v2986_v3 = vpop.f32.mrb[53].mxu1  ;;  %v3050_v1 = vpop.f32.mrb[53].mxu0 }
 0x1b6   : > { %v2987_v7 = vadd.f32 %v2986_v3, %v2985_v62  ;;  %v3051_v22 = vadd.f32 %v3050_v1, %v3049_v52  ;;  %v2988_v44 = vpop.f32.mrb[54].mxu1  ;;  %v3052_v32 = vpop.f32.mrb[54].mxu0 }
 0x1b7   : > { %v2989_v37 = vpop.f32.mrb[55].mxu1  ;;  %v3053_v30 = vpop.f32.mrb[55].mxu0 }
 0x1b8   : > { %v4255_v20 = vadd.f32 %v2987_v7, %v4215_v35  ;;  %v4258_v45 = vadd.f32 %v3051_v22, %v4171_v43  ;;  %v2990_v18 = vadd.f32 %v2989_v37, %v2988_v44  ;;  %v3054_v2 = vadd.f32 %v3053_v30, %v3052_v32 }
 0x1ba   : > { %v4260_v55 = vadd.f32 %v2990_v18, %v2878_v42  ;;  %v4263_v5 = vadd.f32 %v3054_v2, %v4177_v63 }
 0x1bc   : > { %v2991_v12 = vpop.f32.mrb[56].mxu1  ;;  %v3055_v6 = vpop.f32.mrb[56].mxu0 }
 0x1bd   : > { %v2992_v13 = vpop.f32.mrb[57].mxu1  ;;  %v3056_v33 = vpop.f32.mrb[57].mxu0 }
 0x1be   : > { %v2993_v31 = vadd.f32 %v2992_v13, %v2991_v12  ;;  %v3057_v17 = vadd.f32 %v3056_v33, %v3055_v6  ;;  %v2994_v10 = vpop.f32.mrb[58].mxu1  ;;  %v3058_v36 = vpop.f32.mrb[58].mxu0 }
 0x1bf   : > { %v2995_v35 = vpop.f32.mrb[59].mxu1  ;;  %v3059_v46 = vpop.f32.mrb[59].mxu0 }
 0x1c0   : > { %v4266_v43 = vadd.f32 %v2993_v31, %v4223_v58  ;;  %v4269_v28 = vadd.f32 %v3057_v17, %v4184_v57  ;;  %v2996_v42 = vadd.f32 %v2995_v35, %v2994_v10  ;;  %v3060_v50 = vadd.f32 %v3059_v46, %v3058_v36 }
 0x1c2   : > { %v4272_v63 = vadd.f32 %v2996_v42, %v4228_v41  ;;  %v4275_v38 = vadd.f32 %v3060_v50, %v4190_v14 }
 0x1c4   : > { %v2997_v47 = vpop.f32.mrb[60].mxu1  ;;  %v3061_v48 = vpop.f32.mrb[60].mxu0 }
 0x1c5   : > { %v2998_v56 = vpop.f32.mrb[61].mxu1  ;;  %v3062_v54 = vpop.f32.mrb[61].mxu0 }
 0x1c6   : > { %v2999_v62 = vadd.f32 %v2998_v56, %v2997_v47  ;;  %v3063_v52 = vadd.f32 %v3062_v54, %v3061_v48  ;;  %v3000_v3 = vpop.f32.mrb[62].mxu1  ;;  %v3064_v58 = vpop.f32.mrb[62].mxu0 }
 0x1c7   : > { %v3001_v1 = vpop.f32.mrb[63].mxu1  ;;  %v3065_v7 = vpop.f32.mrb[63].mxu0 }
 0x1c8   : > { %v4278_v57 = vadd.f32 %v2999_v62, %v4233_v61  ;;  %v4281_v22 = vadd.f32 %v3063_v52, %v4197_v60  ;;  %v3002_v41 = vadd.f32 %v3001_v1, %v3000_v3  ;;  %v3066_v44 = vadd.f32 %v3065_v7, %v3064_v58 }
 0x1ca   : > { %v4284_v14 = vadd.f32 %v3002_v41, %v4238_v59  ;;  %v4287_v32 = vadd.f32 %v3066_v44, %v4204_v23 }
 0x1cc   : > { %v3003_v37 = vpop.f32.mrb[64].mxu1  ;;  %v3067_v30 = vpop.f32.mrb[64].mxu0 }
 0x1cd   : > { %v3004_v18 = vpop.f32.mrb[65].mxu1  ;;  %v3068_v2 = vpop.f32.mrb[65].mxu0 }
 0x1ce   : > { %v3005_v12 = vadd.f32 %v3004_v18, %v3003_v37  ;;  %v3069_v6 = vadd.f32 %v3068_v2, %v3067_v30  ;;  %v3006_v13 = vpop.f32.mrb[66].mxu1  ;;  %v3070_v61 = vpop.f32.mrb[66].mxu0 }
 0x1cf   : > { %v3007_v33 = vpop.f32.mrb[67].mxu1  ;;  %v3071_v31 = vpop.f32.mrb[67].mxu0 }
 0x1d0   : > { %v4290_v60 = vadd.f32 %v3005_v12, %v4111_v34  ;;  %v4293_v17 = vadd.f32 %v3069_v6, %v4210_v16  ;;  %v3008_v59 = vadd.f32 %v3007_v33, %v3006_v13  ;;  %v3072_v10 = vadd.f32 %v3071_v31, %v3070_v61 }
 0x1d2   : > { %v4296_v23 = vadd.f32 %v3008_v59, %v4115_v39  ;;  %v4299_v36 = vadd.f32 %v3072_v10, %v4213_v25 }
 0x1d4   : > { %v3009_v35 = vpop.f32.mrb[68].mxu1  ;;  %v3073_v46 = vpop.f32.mrb[68].mxu0 }
 0x1d5   : > { %v3010_v42 = vpop.f32.mrb[69].mxu1  ;;  %v3074_v50 = vpop.f32.mrb[69].mxu0 }
 0x1d6   : > { %v3011_v47 = vadd.f32 %v3010_v42, %v3009_v35  ;;  %v3075_v48 = vadd.f32 %v3074_v50, %v3073_v46  ;;  %v3012_v56 = vpop.f32.mrb[70].mxu1  ;;  %v3076_v34 = vpop.f32.mrb[70].mxu0 }
 0x1d7   : > { %v3013_v54 = vpop.f32.mrb[71].mxu1  ;;  %v3077_v62 = vpop.f32.mrb[71].mxu0 }
 0x1d8   : > { %v4302_v16 = vadd.f32 %v3011_v47, %v4122_v49  ;;  %v4305_v52 = vadd.f32 %v3075_v48, %v4218_v40  ;;  %v3014_v39 = vadd.f32 %v3013_v54, %v3012_v56  ;;  %v3078_v3 = vadd.f32 %v3077_v62, %v3076_v34 }
 0x1da   : > { %v4308_v25 = vadd.f32 %v3014_v39, %v4126_v0  ;;  %v4311_v58 = vadd.f32 %v3078_v3, %v4221_v51 }
 0x1dc   : > { %v3015_v1 = vpop.f32.mrb[72].mxu1  ;;  %v3079_v7 = vpop.f32.mrb[72].mxu0 }
 0x1dd   : > { %v3016_v41 = vpop.f32.mrb[73].mxu1  ;;  %v3080_v44 = vpop.f32.mrb[73].mxu0 }
 0x1de   : > { %v3017_v37 = vadd.f32 %v3016_v41, %v3015_v1  ;;  %v3081_v30 = vadd.f32 %v3080_v44, %v3079_v7  ;;  %v3018_v18 = vpop.f32.mrb[74].mxu1  ;;  %v3082_v49 = vpop.f32.mrb[74].mxu0 }
 0x1df   : > { %v3019_v2 = vpop.f32.mrb[75].mxu1  ;;  %v3083_v12 = vpop.f32.mrb[75].mxu0 }
 0x1e0   : > { %v4314_v40 = vadd.f32 %v3017_v37, %v4134_v4  ;;  %v4317_v6 = vadd.f32 %v3081_v30, %v4226_v29  ;;  %v3020_v0 = vadd.f32 %v3019_v2, %v3018_v18  ;;  %v3084_v13 = vadd.f32 %v3083_v12, %v3082_v49 }
 0x1e2   : > { %v4320_v51 = vadd.f32 %v3020_v0, %v4138_v9  ;;  %v4323_v61 = vadd.f32 %v3084_v13, %v4231_v11 }
 0x1e4   : > { %v3021_v33 = vpop.f32.mrb[76].mxu1  ;;  %v3085_v31 = vpop.f32.mrb[76].mxu0 }
 0x1e5   : > { %v3022_v59 = vpop.f32.mrb[77].mxu1  ;;  %v3086_v10 = vpop.f32.mrb[77].mxu0 }
 0x1e6   : > { %v3023_v35 = vadd.f32 %v3022_v59, %v3021_v33  ;;  %v3087_v46 = vadd.f32 %v3086_v10, %v3085_v31  ;;  %v3024_v42 = vpop.f32.mrb[78].mxu1  ;;  %v3088_v4 = vpop.f32.mrb[78].mxu0 }
 0x1e7   : > { %v3025_v50 = vpop.f32.mrb[79].mxu1  ;;  %v3089_v47 = vpop.f32.mrb[79].mxu0 }
 0x1e8   : > { %v4326_v29 = vadd.f32 %v3023_v35, %v4146_v19  ;;  %v4329_v48 = vadd.f32 %v3087_v46, %v4236_v27  ;;  %v3026_v9 = vadd.f32 %v3025_v50, %v3024_v42  ;;  %v3090_v56 = vadd.f32 %v3089_v47, %v3088_v4 }
 0x1ea   : > { %v4332_v11 = vadd.f32 %v3026_v9, %v4150_v8  ;;  %v4335_v34 = vadd.f32 %v3090_v56, %v4241_v15 }
 0x1ec   : > { %v3091_v54 = vpop.f32.mrb[80].mxu0  ;;  %v3155_v62 = vpop.f32.mrb[80].mxu1 }
 0x1ed   : > { %v3092_v39 = vpop.f32.mrb[81].mxu0  ;;  %v3156_v3 = vpop.f32.mrb[81].mxu1 }
 0x1ee   : > { %v3093_v1 = vadd.f32 %v3092_v39, %v3091_v54  ;;  %v3157_v7 = vadd.f32 %v3156_v3, %v3155_v62  ;;  %v3094_v41 = vpop.f32.mrb[82].mxu0  ;;  %v3158_v19 = vpop.f32.mrb[82].mxu1 }
 0x1ef   : > { %v3095_v44 = vpop.f32.mrb[83].mxu0  ;;  %v3159_v37 = vpop.f32.mrb[83].mxu1 }
 0x1f0   : > { %v4338_v27 = vadd.f32 %v3093_v1, %v4244_v26  ;;  %v3096_v30 = vadd.f32 %v3095_v44, %v3094_v41  ;;  %v3160_v18 = vadd.f32 %v3159_v37, %v3158_v19  ;;  %v4341_v8 = vadd.f32 %v3157_v7, %v4247_v53 }
 0x1f2   : > { %v4344_v15 = vadd.f32 %v3096_v30, %v4249_v21  ;;  %v4347_v49 = vadd.f32 %v3160_v18, %v4252_v24 }
 0x1f4   : > { %v3097_v2 = vpop.f32.mrb[84].mxu0  ;;  %v3161_v12 = vpop.f32.mrb[84].mxu1 }
 0x1f5   : > { %v3098_v0 = vpop.f32.mrb[85].mxu0  ;;  %v3162_v13 = vpop.f32.mrb[85].mxu1 }
 0x1f6   : > { %v3099_v33 = vadd.f32 %v3098_v0, %v3097_v2  ;;  %v3163_v31 = vadd.f32 %v3162_v13, %v3161_v12  ;;  %v3100_v59 = vpop.f32.mrb[86].mxu0  ;;  %v3164_v26 = vpop.f32.mrb[86].mxu1 }
 0x1f7   : > { %v3101_v10 = vpop.f32.mrb[87].mxu0  ;;  %v3165_v35 = vpop.f32.mrb[87].mxu1 }
 0x1f8   : > { %v4350_v46 = vadd.f32 %v3099_v33, %v4255_v20  ;;  %v3102_v53 = vadd.f32 %v3101_v10, %v3100_v59  ;;  %v3166_v42 = vadd.f32 %v3165_v35, %v3164_v26  ;;  %v4353_v21 = vadd.f32 %v3163_v31, %v4258_v45 }
 0x1fa   : > { %v4356_v24 = vadd.f32 %v3102_v53, %v4260_v55  ;;  %v4359_v4 = vadd.f32 %v3166_v42, %v4263_v5 }
 0x1fc   : > { %v3103_v50 = vpop.f32.mrb[88].mxu0  ;;  %v3167_v47 = vpop.f32.mrb[88].mxu1 }
 0x1fd   : > { %v3104_v9 = vpop.f32.mrb[89].mxu0  ;;  %v3168_v56 = vpop.f32.mrb[89].mxu1 }
 0x1fe   : > { %v3105_v54 = vadd.f32 %v3104_v9, %v3103_v50  ;;  %v3169_v62 = vadd.f32 %v3168_v56, %v3167_v47  ;;  %v3106_v39 = vpop.f32.mrb[90].mxu0  ;;  %v3170_v20 = vpop.f32.mrb[90].mxu1 }
 0x1ff   : > { %v3107_v3 = vpop.f32.mrb[91].mxu0  ;;  %v3171_v1 = vpop.f32.mrb[91].mxu1 }
 0x200   : > { %v4362_v7 = vadd.f32 %v3105_v54, %v4266_v43  ;;  %v3108_v45 = vadd.f32 %v3107_v3, %v3106_v39  ;;  %v3172_v41 = vadd.f32 %v3171_v1, %v3170_v20  ;;  %v4365_v55 = vadd.f32 %v3169_v62, %v4269_v28 }
 0x202   : > { %v4368_v5 = vadd.f32 %v3108_v45, %v4272_v63  ;;  %v4371_v19 = vadd.f32 %v3172_v41, %v4275_v38 }
 0x204   : > { %v3109_v44 = vpop.f32.mrb[92].mxu0  ;;  %v3173_v37 = vpop.f32.mrb[92].mxu1 }
 0x205   : > { %v3110_v30 = vpop.f32.mrb[93].mxu0  ;;  %v3174_v18 = vpop.f32.mrb[93].mxu1 }
 0x206   : > { %v3111_v2 = vadd.f32 %v3110_v30, %v3109_v44  ;;  %v3175_v12 = vadd.f32 %v3174_v18, %v3173_v37  ;;  %v3112_v0 = vpop.f32.mrb[94].mxu0  ;;  %v3176_v43 = vpop.f32.mrb[94].mxu1 }
 0x207   : > { %v3113_v13 = vpop.f32.mrb[95].mxu0  ;;  %v3177_v33 = vpop.f32.mrb[95].mxu1 }
 0x208   : > { %v4374_v31 = vadd.f32 %v3111_v2, %v4278_v57  ;;  %v3114_v28 = vadd.f32 %v3113_v13, %v3112_v0  ;;  %v3178_v59 = vadd.f32 %v3177_v33, %v3176_v43  ;;  %v4377_v63 = vadd.f32 %v3175_v12, %v4281_v22 }
 0x20a   : > { %v4380_v38 = vadd.f32 %v3114_v28, %v4284_v14  ;;  %v4383_v26 = vadd.f32 %v3178_v59, %v4287_v32 }
 0x20c   : > { %v3115_v10 = vpop.f32.mrb[96].mxu0  ;;  %v3179_v35 = vpop.f32.mrb[96].mxu1 }
 0x20d   : > { %v3116_v53 = vpop.f32.mrb[97].mxu0  ;;  %v3180_v42 = vpop.f32.mrb[97].mxu1 }
 0x20e   : > { %v3117_v50 = vadd.f32 %v3116_v53, %v3115_v10  ;;  %v3181_v47 = vadd.f32 %v3180_v42, %v3179_v35  ;;  %v3118_v9 = vpop.f32.mrb[98].mxu0  ;;  %v3182_v57 = vpop.f32.mrb[98].mxu1 }
 0x20f   : > { %v3119_v56 = vpop.f32.mrb[99].mxu0  ;;  %v3183_v54 = vpop.f32.mrb[99].mxu1 }
 0x210   : > { %v4386_v62 = vadd.f32 %v3117_v50, %v4290_v60  ;;  %v3120_v22 = vadd.f32 %v3119_v56, %v3118_v9  ;;  %v3184_v39 = vadd.f32 %v3183_v54, %v3182_v57  ;;  %v4389_v14 = vadd.f32 %v3181_v47, %v4293_v17 }
 0x212   : > { %v4392_v32 = vadd.f32 %v3120_v22, %v4296_v23  ;;  %v4395_v20 = vadd.f32 %v3184_v39, %v4299_v36 }
 0x214   : > { %v3121_v3 = vpop.f32.mrb[100].mxu0  ;;  %v3185_v1 = vpop.f32.mrb[100].mxu1 }
 0x215   : > { %v3122_v45 = vpop.f32.mrb[101].mxu0  ;;  %v3186_v41 = vpop.f32.mrb[101].mxu1 }
 0x216   : > { %v3123_v44 = vadd.f32 %v3122_v45, %v3121_v3  ;;  %v3187_v37 = vadd.f32 %v3186_v41, %v3185_v1  ;;  %v3124_v30 = vpop.f32.mrb[102].mxu0  ;;  %v3188_v60 = vpop.f32.mrb[102].mxu1 }
 0x217   : > { %v3125_v18 = vpop.f32.mrb[103].mxu0  ;;  %v3189_v2 = vpop.f32.mrb[103].mxu1 }
 0x218   : > { %v4398_v12 = vadd.f32 %v3123_v44, %v4302_v16  ;;  %v3126_v17 = vadd.f32 %v3125_v18, %v3124_v30  ;;  %v3190_v0 = vadd.f32 %v3189_v2, %v3188_v60  ;;  %v4401_v23 = vadd.f32 %v3187_v37, %v4305_v52 }
 0x21a   : > { %v4404_v36 = vadd.f32 %v3126_v17, %v4308_v25  ;;  %v4407_v43 = vadd.f32 %v3190_v0, %v4311_v58 }
 0x21c   : > { %v3127_v13 = vpop.f32.mrb[104].mxu0  ;;  %v3191_v33 = vpop.f32.mrb[104].mxu1 }
 0x21d   : > { %v3128_v28 = vpop.f32.mrb[105].mxu0  ;;  %v3192_v59 = vpop.f32.mrb[105].mxu1 }
 0x21e   : > { %v3129_v10 = vadd.f32 %v3128_v28, %v3127_v13  ;;  %v3193_v35 = vadd.f32 %v3192_v59, %v3191_v33  ;;  %v3130_v53 = vpop.f32.mrb[106].mxu0  ;;  %v3194_v16 = vpop.f32.mrb[106].mxu1 }
 0x21f   : > { %v3131_v42 = vpop.f32.mrb[107].mxu0  ;;  %v3195_v50 = vpop.f32.mrb[107].mxu1 }
 0x220   : > { %v4410_v47 = vadd.f32 %v3129_v10, %v4314_v40  ;;  %v3132_v52 = vadd.f32 %v3131_v42, %v3130_v53  ;;  %v3196_v9 = vadd.f32 %v3195_v50, %v3194_v16  ;;  %v4413_v25 = vadd.f32 %v3193_v35, %v4317_v6 }
 0x222   : > { %v4416_v58 = vadd.f32 %v3132_v52, %v4320_v51  ;;  %v4419_v57 = vadd.f32 %v3196_v9, %v4323_v61 }
 0x224   : > { %v3133_v56 = vpop.f32.mrb[108].mxu0  ;;  %v3197_v54 = vpop.f32.mrb[108].mxu1 }
 0x225   : > { %v3134_v22 = vpop.f32.mrb[109].mxu0  ;;  %v3198_v39 = vpop.f32.mrb[109].mxu1 }
 0x226   : > { %v3135_v3 = vadd.f32 %v3134_v22, %v3133_v56  ;;  %v3199_v1 = vadd.f32 %v3198_v39, %v3197_v54  ;;  %v3136_v45 = vpop.f32.mrb[110].mxu0  ;;  %v3200_v40 = vpop.f32.mrb[110].mxu1 }
 0x227   : > { %v3137_v41 = vpop.f32.mrb[111].mxu0  ;;  %v3201_v44 = vpop.f32.mrb[111].mxu1 }
 0x228   : > { %v4422_v6 = vadd.f32 %v3135_v3, %v4326_v29  ;;  %v3138_v37 = vadd.f32 %v3137_v41, %v3136_v45  ;;  %v3202_v51 = vadd.f32 %v3201_v44, %v3200_v40  ;;  %v4425_v30 = vadd.f32 %v3199_v1, %v4329_v48 }
 0x22a   : > { %v4428_v61 = vadd.f32 %v3138_v37, %v4332_v11  ;;  %v4431_v60 = vadd.f32 %v3202_v51, %v4335_v34 }
 0x22c   : > { %v3203_v18 = vpop.f32.mrb[112].mxu1  ;;  %v3293_v2 = vpop.f32.mrb[112].mxu0 }
 0x22d   : > { %v2304_v17 = vadd.f32 %v3293_v2, %v4353_v21  ;;  %v3204_v0 = vpop.f32.mrb[113].mxu1  ;;  %v2295_v13 = vpop.f32.mrb[113].mxu0 }
 0x22e   : > { %v3205_v33 = vadd.f32 %v3204_v0, %v3203_v18  ;;  %v2296_v29 = vadd.f32 %v2295_v13, %v4341_v8  ;;  %v3206_v28 = vpop.f32.mrb[114].mxu1  ;;  %v3294_v59 = vpop.f32.mrb[114].mxu0 }
 0x22f   : > { %2424 = vst [vmem:[%s4437_s18 + $0x10] sm:$0xff] %v2304_v17  ;;  %v2307_v48 = vadd.f32 %v3294_v59, %v4359_v4  ;;  %v3207_v11 = vpop.f32.mrb[115].mxu1  ;;  %v2298_v34 = vpop.f32.mrb[115].mxu0  ;;  %v2493_v50 = vmul.f32 %v2304_v17, %v2304_v17 }
 0x230   : > { %2422 = vst [vmem:[%s4437_s18] sm:$0xff] %v2296_v29  ;;  %v3208_v21 = vadd.f32 %v3207_v11, %v3206_v28  ;;  %v2299_v10 = vadd.f32 %v2298_v34, %v4347_v49  ;;  %v4444_v8 = vadd.f32 %v3205_v33, %v4338_v27  ;;  %v2491_v35 = vmul.f32 %v2296_v29, %v2296_v29 }
 0x231   : > { %2425 = vst [vmem:[%s4437_s18 + $0x18] sm:$0xff] %v2307_v48  ;;  %v2494_v54 = vmul.f32 %v2307_v48, %v2307_v48 }
 0x232   : > { %2423 = vst [vmem:[%s4437_s18 + $0x8] sm:$0xff] %v2299_v10  ;;  %v2454_v53 = vadd.f32 %v2299_v10, %v2296_v29  ;;  %v2492_v16 = vmul.f32 %v2299_v10, %v2299_v10  ;;  %v4449_v42 = vadd.f32 %v3208_v21, %v4344_v15 }
 0x234   : > { %v2455_v4 = vadd.f32 %v2454_v53, %v2304_v17  ;;  %v2523_v52 = vadd.f32 %v2492_v16, %v2491_v35  ;;  %v3209_v9 = vpop.f32.mrb[116].mxu1  ;;  %v3297_v56 = vpop.f32.mrb[116].mxu0 }
 0x235   : > { %v2320_v49 = vadd.f32 %v3297_v56, %v4377_v63  ;;  %v3210_v27 = vpop.f32.mrb[117].mxu1  ;;  %v2311_v22 = vpop.f32.mrb[117].mxu0 }
 0x236   : > { %v2524_v39 = vadd.f32 %v2523_v52, %v2493_v50  ;;  %v3211_v3 = vadd.f32 %v3210_v27, %v3209_v9  ;;  %v2312_v1 = vadd.f32 %v2311_v22, %v4365_v55  ;;  %v2456_v45 = vadd.f32 %v2455_v4, %v2307_v48  ;;  %v3212_v15 = vpop.f32.mrb[118].mxu1  ;;  %v3298_v40 = vpop.f32.mrb[118].mxu0 }
 0x237   : > { %2428 = vst [vmem:[%s4437_s18 + $0x30] sm:$0xff] %v2320_v49  ;;  %v2323_v41 = vadd.f32 %v3298_v40, %v4383_v26  ;;  %v3213_v44 = vpop.f32.mrb[119].mxu1  ;;  %v2314_v37 = vpop.f32.mrb[119].mxu0  ;;  %v2497_v59 = vmul.f32 %v2320_v49, %v2320_v49 }
 0x238   : > { %2426 = vst [vmem:[%s4437_s18 + $0x20] sm:$0xff] %v2312_v1  ;;  %v2457_v51 = vadd.f32 %v2456_v45, %v2312_v1  ;;  %v2495_v18 = vmul.f32 %v2312_v1, %v2312_v1  ;;  %v2525_v63 = vadd.f32 %v2524_v39, %v2494_v54  ;;  %v3214_v2 = vadd.f32 %v3213_v44, %v3212_v15 }
 0x239   : > { %2429 = vst [vmem:[%s4437_s18 + $0x38] sm:$0xff] %v2323_v41  ;;  %v2315_v17 = vadd.f32 %v2314_v37, %v4371_v19  ;;  %v4459_v0 = vadd.f32 %v3211_v3, %v4350_v46  ;;  %v2498_v53 = vmul.f32 %v2323_v41, %v2323_v41 }
 0x23a   : > { %v2526_v55 = vadd.f32 %v2525_v63, %v2495_v18  ;;  %v4462_v13 = vadd.f32 %v3214_v2, %v4356_v24 }
 0x23b   : > { %2427 = vst [vmem:[%s4437_s18 + $0x28] sm:$0xff] %v2315_v17  ;;  %v2458_v33 = vadd.f32 %v2457_v51, %v2315_v17  ;;  %v2496_v26 = vmul.f32 %v2315_v17, %v2315_v17 }
 0x23c   : > { %v3215_v29 = vpop.f32.mrb[120].mxu1  ;;  %v3301_v28 = vpop.f32.mrb[120].mxu0 }
 0x23d   : > { %v2459_v48 = vadd.f32 %v2458_v33, %v2320_v49  ;;  %v2527_v11 = vadd.f32 %v2526_v55, %v2496_v26  ;;  %v2336_v34 = vadd.f32 %v3301_v28, %v4401_v23  ;;  %v3216_v19 = vpop.f32.mrb[121].mxu1  ;;  %v2327_v21 = vpop.f32.mrb[121].mxu0 }
 0x23e   : > { %v3217_v46 = vadd.f32 %v3216_v19, %v3215_v29  ;;  %v2328_v10 = vadd.f32 %v2327_v21, %v4389_v14  ;;  %v3218_v35 = vpop.f32.mrb[122].mxu1  ;;  %v3302_v24 = vpop.f32.mrb[122].mxu0 }
 0x23f   : > { %v2528_v16 = vadd.f32 %v2527_v11, %v2497_v59  ;;  %2432 = vst [vmem:[%s4437_s18 + $0x50] sm:$0xff] %v2336_v34  ;;  %v2460_v50 = vadd.f32 %v2459_v48, %v2323_v41  ;;  %v2339_v4 = vadd.f32 %v3302_v24, %v4407_v43  ;;  %v3219_v52 = vpop.f32.mrb[123].mxu1  ;;  %v2330_v9 = vpop.f32.mrb[123].mxu0  ;;  %v2501_v15 = vmul.f32 %v2336_v34, %v2336_v34 }
 0x240   : > { %2430 = vst [vmem:[%s4437_s18 + $0x40] sm:$0xff] %v2328_v10  ;;  %v2499_v56 = vmul.f32 %v2328_v10, %v2328_v10  ;;  %v3220_v23 = vadd.f32 %v3219_v52, %v3218_v35  ;;  %v2331_v54 = vadd.f32 %v2330_v9, %v4395_v20  ;;  %v4472_v49 = vadd.f32 %v3217_v46, %v4362_v7 }
 0x241   : > { %v2461_v14 = vadd.f32 %v2460_v50, %v2328_v10  ;;  %v2529_v27 = vadd.f32 %v2528_v16, %v2498_v53  ;;  %2433 = vst [vmem:[%s4437_s18 + $0x58] sm:$0xff] %v2339_v4  ;;  %v2502_v63 = vmul.f32 %v2339_v4, %v2339_v4 }
 0x242   : > { %2431 = vst [vmem:[%s4437_s18 + $0x48] sm:$0xff] %v2331_v54  ;;  %v2500_v22 = vmul.f32 %v2331_v54, %v2331_v54  ;;  %v4477_v39 = vadd.f32 %v3220_v23, %v4368_v5 }
 0x243   : > { %v2530_v3 = vadd.f32 %v2529_v27, %v2499_v56  ;;  %v2462_v43 = vadd.f32 %v2461_v14, %v2331_v54 }
 0x244   : > { %v3221_v1 = vpop.f32.mrb[124].mxu1  ;;  %v3305_v45 = vpop.f32.mrb[124].mxu0 }
 0x245   : > { %v2463_v40 = vadd.f32 %v2462_v43, %v2336_v34  ;;  %v2531_v20 = vadd.f32 %v2530_v3, %v2500_v22  ;;  %v2352_v7 = vadd.f32 %v3305_v45, %v4425_v30  ;;  %v3222_v41 = vpop.f32.mrb[125].mxu1  ;;  %v2343_v44 = vpop.f32.mrb[125].mxu0 }
 0x246   : > { %v3223_v37 = vadd.f32 %v3222_v41, %v3221_v1  ;;  %v2344_v51 = vadd.f32 %v2343_v44, %v4413_v25  ;;  %v3224_v18 = vpop.f32.mrb[126].mxu1  ;;  %v3306_v5 = vpop.f32.mrb[126].mxu0 }
 0x247   : > { %v2532_v2 = vadd.f32 %v2531_v20, %v2501_v15  ;;  %2436 = vst [vmem:[%s4437_s18 + $0x70] sm:$0xff] %v2352_v7  ;;  %v2464_v17 = vadd.f32 %v2463_v40, %v2339_v4  ;;  %v2355_v55 = vadd.f32 %v3306_v5, %v4431_v60  ;;  %v3225_v33 = vpop.f32.mrb[127].mxu1  ;;  %v2346_v26 = vpop.f32.mrb[127].mxu0  ;;  %v2505_v10 = vmul.f32 %v2352_v7, %v2352_v7 }
 0x248   : > { %2434 = vst [vmem:[%s4437_s18 + $0x60] sm:$0xff] %v2344_v51  ;;  %v2503_v29 = vmul.f32 %v2344_v51, %v2344_v51  ;;  %v3226_v30 = vadd.f32 %v3225_v33, %v3224_v18  ;;  %v2347_v28 = vadd.f32 %v2346_v26, %v4419_v57  ;;  %v2223_v59 = vadd.f32 %v3223_v37, %v4374_v31 }
 0x249   : > { %v2465_v25 = vadd.f32 %v2464_v17, %v2344_v51  ;;  %v2533_v48 = vadd.f32 %v2532_v2, %v2502_v63  ;;  %2437 = vst [vmem:[%s4437_s18 + $0x78] sm:$0xff] %v2355_v55 }
 0x24a   : > { %2435 = vst [vmem:[%s4437_s18 + $0x68] sm:$0xff] %v2347_v28  ;;  %v2504_v11 = vmul.f32 %v2347_v28, %v2347_v28  ;;  %v2226_v34 = vadd.f32 %v3226_v30, %v4380_v38  ;;  %v2506_v38 = vmul.f32 %v2355_v55, %v2355_v55 }
 0x24b   : > { %v2534_v19 = vadd.f32 %v2533_v48, %v2503_v29  ;;  %v2466_v21 = vadd.f32 %v2465_v25, %v2347_v28 }
 0x24c   : > { %v3227_v60 = vpop.f32.mrb[128].mxu1  ;;  %v3309_v46 = vpop.f32.mrb[128].mxu0 }
 0x24d   : > { %v2467_v35 = vadd.f32 %v2466_v21, %v2352_v7  ;;  %v2535_v24 = vadd.f32 %v2534_v19, %v2504_v11  ;;  %v2368_v57 = vadd.f32 %v3309_v46, %v4459_v0  ;;  %v3228_v53 = vpop.f32.mrb[129].mxu1  ;;  %v2359_v31 = vpop.f32.mrb[129].mxu0 }
 0x24e   : > { %v3229_v16 = vadd.f32 %v3228_v53, %v3227_v60  ;;  %v2360_v50 = vadd.f32 %v2359_v31, %v4444_v8  ;;  %v3230_v4 = vpop.f32.mrb[130].mxu1  ;;  %v3310_v52 = vpop.f32.mrb[130].mxu0 }
 0x24f   : > { %v2536_v9 = vadd.f32 %v2535_v24, %v2505_v10  ;;  %2440 = vst [vmem:[%s4437_s18 + $0x90] sm:$0xff] %v2368_v57  ;;  %v2468_v56 = vadd.f32 %v2467_v35, %v2355_v55  ;;  %v2371_v23 = vadd.f32 %v3310_v52, %v4462_v13  ;;  %v3231_v54 = vpop.f32.mrb[131].mxu1  ;;  %v2362_v14 = vpop.f32.mrb[131].mxu0  ;;  %v2509_v7 = vmul.f32 %v2368_v57, %v2368_v57 }
 0x250   : > { %2438 = vst [vmem:[%s4437_s18 + $0x80] sm:$0xff] %v2360_v50  ;;  %v2507_v27 = vmul.f32 %v2360_v50, %v2360_v50  ;;  %v3232_v0 = vadd.f32 %v3231_v54, %v3230_v4  ;;  %v2363_v22 = vadd.f32 %v2362_v14, %v4449_v42  ;;  %v2231_v3 = vadd.f32 %v3229_v16, %v4386_v62 }
 0x251   : > { %v2469_v8 = vadd.f32 %v2468_v56, %v2360_v50  ;;  %v2537_v43 = vadd.f32 %v2536_v9, %v2506_v38  ;;  %2441 = vst [vmem:[%s4437_s18 + $0x98] sm:$0xff] %v2371_v23 }
 0x252   : > { %2439 = vst [vmem:[%s4437_s18 + $0x88] sm:$0xff] %v2363_v22  ;;  %v2508_v1 = vmul.f32 %v2363_v22, %v2363_v22  ;;  %v2234_v45 = vadd.f32 %v3232_v0, %v4392_v32  ;;  %v2510_v32 = vmul.f32 %v2371_v23, %v2371_v23 }
 0x253   : > { %v2538_v15 = vadd.f32 %v2537_v43, %v2507_v27  ;;  %v2470_v40 = vadd.f32 %v2469_v8, %v2363_v22 }
 0x254   : > { %v3233_v13 = vpop.f32.mrb[132].mxu1  ;;  %v3313_v20 = vpop.f32.mrb[132].mxu0 }
 0x255   : > { %v2471_v41 = vadd.f32 %v2470_v40, %v2368_v57  ;;  %v2539_v44 = vadd.f32 %v2538_v15, %v2508_v1  ;;  %v2384_v37 = vadd.f32 %v3313_v20, %v2223_v59  ;;  %v3234_v42 = vpop.f32.mrb[133].mxu1  ;;  %v2375_v51 = vpop.f32.mrb[133].mxu0 }
 0x256   : > { %v3235_v62 = vadd.f32 %v3234_v42, %v3233_v13  ;;  %v2376_v18 = vadd.f32 %v2375_v51, %v4472_v49  ;;  %v3236_v5 = vpop.f32.mrb[134].mxu1  ;;  %v3314_v63 = vpop.f32.mrb[134].mxu0 }
 0x257   : > { %v2540_v2 = vadd.f32 %v2539_v44, %v2509_v7  ;;  %2444 = vst [vmem:[%s4437_s18 + $0xb0] sm:$0xff] %v2384_v37  ;;  %v2472_v17 = vadd.f32 %v2471_v41, %v2371_v23  ;;  %v2387_v55 = vadd.f32 %v3314_v63, %v2226_v34  ;;  %v3237_v33 = vpop.f32.mrb[135].mxu1  ;;  %v2378_v26 = vpop.f32.mrb[135].mxu0  ;;  %v2513_v46 = vmul.f32 %v2384_v37, %v2384_v37 }
 0x258   : > { %2442 = vst [vmem:[%s4437_s18 + $0xa0] sm:$0xff] %v2376_v18  ;;  %v2511_v29 = vmul.f32 %v2376_v18, %v2376_v18  ;;  %v3238_v30 = vadd.f32 %v3237_v33, %v3236_v5  ;;  %v2379_v28 = vadd.f32 %v2378_v26, %v4477_v39  ;;  %v2239_v59 = vadd.f32 %v3235_v62, %v4398_v12 }
 0x259   : > { %v2473_v25 = vadd.f32 %v2472_v17, %v2376_v18  ;;  %v2541_v49 = vadd.f32 %v2540_v2, %v2510_v32  ;;  %2445 = vst [vmem:[%s4437_s18 + $0xb8] sm:$0xff] %v2387_v55  ;;  %v2514_v50 = vmul.f32 %v2387_v55, %v2387_v55 }
 0x25a   : > { %2443 = vst [vmem:[%s4437_s18 + $0xa8] sm:$0xff] %v2379_v28  ;;  %v2512_v48 = vmul.f32 %v2379_v28, %v2379_v28  ;;  %v2242_v11 = vadd.f32 %v3238_v30, %v4404_v36 }
 0x25b   : > { %v2542_v19 = vadd.f32 %v2541_v49, %v2511_v29  ;;  %v2474_v21 = vadd.f32 %v2473_v25, %v2379_v28 }
 0x25c   : > { %v3239_v34 = vpop.f32.mrb[136].mxu1  ;;  %v3317_v60 = vpop.f32.mrb[136].mxu0 }
 0x25d   : > { %v2475_v10 = vadd.f32 %v2474_v21, %v2384_v37  ;;  %v2543_v35 = vadd.f32 %v2542_v19, %v2512_v48  ;;  %v2400_v24 = vadd.f32 %v3317_v60, %v2239_v59  ;;  %v3240_v39 = vpop.f32.mrb[137].mxu1  ;;  %v2391_v57 = vpop.f32.mrb[137].mxu0 }
 0x25e   : > { %v3241_v12 = vadd.f32 %v3240_v39, %v3239_v34  ;;  %v2392_v53 = vadd.f32 %v2391_v57, %v2231_v3  ;;  %v3242_v31 = vpop.f32.mrb[138].mxu1  ;;  %v3318_v16 = vpop.f32.mrb[138].mxu0 }
 0x25f   : > { %v2544_v36 = vadd.f32 %v2543_v35, %v2513_v46  ;;  %2448 = vst [vmem:[%s4437_s18 + $0xd0] sm:$0xff] %v2400_v24  ;;  %v2476_v4 = vadd.f32 %v2475_v10, %v2387_v55  ;;  %v2403_v52 = vadd.f32 %v3318_v16, %v2242_v11  ;;  %v3243_v38 = vpop.f32.mrb[139].mxu1  ;;  %v2394_v9 = vpop.f32.mrb[139].mxu0  ;;  %v2517_v40 = vmul.f32 %v2400_v24, %v2400_v24 }
 0x260   : > { %2446 = vst [vmem:[%s4437_s18 + $0xc0] sm:$0xff] %v2392_v53  ;;  %v2515_v56 = vmul.f32 %v2392_v53, %v2392_v53  ;;  %v3244_v23 = vadd.f32 %v3243_v38, %v3242_v31  ;;  %v2395_v54 = vadd.f32 %v2394_v9, %v2234_v45  ;;  %v2247_v14 = vadd.f32 %v3241_v12, %v4410_v47 }
 0x261   : > { %v2477_v27 = vadd.f32 %v2476_v4, %v2392_v53  ;;  %v2545_v0 = vadd.f32 %v2544_v36, %v2514_v50  ;;  %2449 = vst [vmem:[%s4437_s18 + $0xd8] sm:$0xff] %v2403_v52  ;;  %v2518_v42 = vmul.f32 %v2403_v52, %v2403_v52 }
 0x262   : > { %2447 = vst [vmem:[%s4437_s18 + $0xc8] sm:$0xff] %v2395_v54  ;;  %v2516_v22 = vmul.f32 %v2395_v54, %v2395_v54  ;;  %v2250_v3 = vadd.f32 %v3244_v23, %v4416_v58 }
 0x263   : > { %v2546_v8 = vadd.f32 %v2545_v0, %v2515_v56  ;;  %v2478_v43 = vadd.f32 %v2477_v27, %v2395_v54 }
 0x264   : > { %v3245_v1 = vpop.f32.mrb[140].mxu1  ;;  %v3321_v15 = vpop.f32.mrb[140].mxu0 }
 0x265   : > { %v2479_v13 = vadd.f32 %v2478_v43, %v2400_v24  ;;  %v2547_v20 = vadd.f32 %v2546_v8, %v2516_v22  ;;  %v3246_v7 = vpop.f32.mrb[141].mxu1  ;;  %v2407_v45 = vpop.f32.mrb[141].mxu0 }
 0x266   : > { %v3247_v47 = vadd.f32 %v3246_v7, %v3245_v1  ;;  %v2408_v41 = vadd.f32 %v2407_v45, %v2247_v14  ;;  %v3248_v44 = vpop.f32.mrb[142].mxu1  ;;  %v3322_v37 = vpop.f32.mrb[142].mxu0 }
 0x267   : > { %v2548_v51 = vadd.f32 %v2547_v20, %v2517_v40  ;;  %v2480_v58 = vadd.f32 %v2479_v13, %v2403_v52  ;;  %v3249_v62 = vpop.f32.mrb[143].mxu1  ;;  %v2410_v18 = vpop.f32.mrb[143].mxu0 }
 0x268   : > { %v2255_v5 = vadd.f32 %v3247_v47, %v4422_v6  ;;  %2450 = vst [vmem:[%s4437_s18 + $0xe0] sm:$0xff] %v2408_v41  ;;  %v2519_v63 = vmul.f32 %v2408_v41, %v2408_v41  ;;  %v3250_v32 = vadd.f32 %v3249_v62, %v3248_v44  ;;  %v2411_v2 = vadd.f32 %v2410_v18, %v2250_v3 }
 0x269   : > { %v2481_v17 = vadd.f32 %v2480_v58, %v2408_v41  ;;  %v2549_v55 = vadd.f32 %v2548_v51, %v2518_v42 }
 0x26a   : > { %v2416_v33 = vadd.f32 %v3321_v15, %v2255_v5  ;;  %v2258_v26 = vadd.f32 %v3250_v32, %v4428_v61  ;;  %2451 = vst [vmem:[%s4437_s18 + $0xe8] sm:$0xff] %v2411_v2  ;;  %v2520_v29 = vmul.f32 %v2411_v2, %v2411_v2 }
 0x26b   : > { %v2550_v30 = vadd.f32 %v2549_v55, %v2519_v63  ;;  %v2482_v28 = vadd.f32 %v2481_v17, %v2411_v2 }
 0x26c   : > { %2452 = vst [vmem:[%s4437_s18 + $0xf0] sm:$0xff] %v2416_v33  ;;  %v2521_v6 = vmul.f32 %v2416_v33, %v2416_v33  ;;  %v2419_v59 = vadd.f32 %v3322_v37, %v2258_v26 }
 0x26d   : > { %v2483_v61 = vadd.f32 %v2482_v28, %v2416_v33  ;;  %v2551_v25 = vadd.f32 %v2550_v30, %v2520_v29 }
 0x26e   : > { %2453 = vst [vmem:[%s4437_s18 + $0xf8] sm:$0xff] %v2419_v59  ;;  %v2522_v49 = vmul.f32 %v2419_v59, %v2419_v59 }
 0x26f   : > { %v2484_v48 = vadd.f32 %v2483_v61, %v2419_v59  ;;  %v2552_v11 = vadd.f32 %v2551_v25, %v2521_v6 }
 0x270   : > { %3552 = shalt.err (!%p3549_p7)
}
 0x271   : > { %s3553_s23 = scalar_lea.hbm %s4522_s5, 4096  ;;  %s3557_s7 = scalar_lea.hbm %s4603_s2, 8192 }
 0x272   : > { %p3554_p9 = scmp.ne.s32.totalorder %s4522_s5, %s3553_s23  ;;  %p3558_p5 = scmp.lt.u32.totalorder %s4522_s5, %s4603_s2 }
 0x273   : > { %p3559_p11 = scmp.lt.u32.totalorder %s3557_s7, %s3553_s23  ;;  %p3561_p4 = scmp.lt.u32.totalorder %s3553_s23, %s4522_s5 }
 0x274   : > { %p3555_p2 = pnand %p3554_p9, %p3766_p12 }
 0x275   : > { %p3560_p1 = por %p3559_p11, %p3558_p5 }
 0x276   : > { %p3556_p0 = pneg %p3555_p2 }
 0x277   : > { %p3562_p6 = por %p3561_p4, %p3560_p1 }
 0x279   : > { %p3563_p8 = pnand %p3562_p6, %p3556_p0 }
 0x27b   : > { %3566 = shalt.err (!%p3563_p8)
}
 0x27c   : > { %s3652_s18 = smov 128   ;;  %s3653_s20 = smov 8   ;;  %v2485_v19 = vrot.slane %v2484_v48, 4  ;;  %v2553_v21 = vadd.f32 %v2552_v11, %v2522_v49  ;;  %vm2560_vm0 = vcmask 1040384  }
 0x27d   : > { %3345 = dma.vmem_to_hbm [thread:$0]  (%p3766_p12), %s4524_s4, 4096, %s4522_s5, %s2564_s10, %s3652_s18, %s3652_s18, %s3653_s20  }
 0x27e   : > { %v2486_v34 = vadd.f32 %v2485_v19, %v2484_v48  ;;  %v2554_v60 = vrot.slane %v2553_v21, 4  ;;  %s2721_s25 = sshll.u32 %s3814_s6, 1  ;;  %s2798_s26 = sshll.u32 %s3696_s16, 5 }
 0x27f   : > { %s214_s11 = scalar_lea.vmem [#allocation10], %s2721_s25  ;;  %s4557_s10 = scalar_lea.hbm %s4604_s3, %s2798_s26 }
 0x280   : > { %v2487_v46 = vrot.slane %v2486_v34, 2  ;;  %v2555_v10 = vadd.f32 %v2554_v60, %v2553_v21  ;;  %s2598_s27 = sshll.u32 %s214_s11, 4  ;;  %s2569_s28 = scalar_lea.sflag [#allocation11], %s3814_s6  ;;  %s4559_s27 = int_to_ptr.vmem [resolvable:$true] %s2598_s27 }
 0x281   : > { %s3567_s29 = scalar_lea.vmem %s4559_s27, 32  ;;  %s3654_s16 = smov [#allocation10]  }
 0x282   : > { %v2488_v35 = vadd.f32 %v2487_v46, %v2486_v34  ;;  %v2556_v24 = vrot.slane %v2555_v10, 2  ;;  %p3568_p10 = scmp.ne.s32.totalorder %s4559_s27, %s3567_s29  ;;  %s3571_s23 = sshll.u32 %s3654_s16, 4  ;;  %s3572_s23 = int_to_ptr.vmem [resolvable:$false] %s3571_s23 }
 0x283   : > { %s3573_s30 = scalar_lea.vmem %s3572_s23, 64  ;;  %p3574_p7 = scmp.lt.s32.totalorder %s4559_s27, %s3572_s23 }
 0x284   : > { %v2489_v39 = vrot.slane %v2488_v35, 1  ;;  %v2557_v57 = vadd.f32 %v2556_v24, %v2555_v10  ;;  %p3569_p13 = pnand %p3568_p10, %p3766_p12  ;;  %p3575_p9 = scmp.lt.s32.totalorder %s3573_s30, %s3567_s29 }
 0x286   : > { %v2558_v12 = vrot.slane %v2557_v57, 1  ;;  %v2490_v53 = vadd.f32 %v2489_v39, %v2488_v35  ;;  %p3570_p3 = pneg %p3569_p13  ;;  %p3576_p2 = por %p3575_p9, %p3574_p7 }
 0x288   : > { %v2559_v31 = vadd.f32 %v2558_v12, %v2557_v57  ;;  %p3577_p0 = pnand %p3576_p2, %p3570_p3 }
 0x28a   : > { %v2561_v16 = vsel %vm2560_vm0, %v2490_v53, %v2559_v31 }
 0x28b   : > { %2562 = vst [vmem:[%s214_s11] sm:$0x3] %v2561_v16 }
 0x28c   : > { %3580 = shalt.err (!%p3577_p0)
}
 0x28d   : > { %s3581_s6 = scalar_lea.hbm %s4557_s10, 32  ;;  %s3585_s8 = scalar_lea.hbm %s4604_s3, 64 }
 0x28e   : > { %p3582_p5 = scmp.ne.s32.totalorder %s4557_s10, %s3581_s6  ;;  %p3586_p4 = scmp.lt.u32.totalorder %s4557_s10, %s4604_s3 }
 0x28f   : > { %p3587_p6 = scmp.lt.u32.totalorder %s3585_s8, %s3581_s6  ;;  %p3589_p10 = scmp.lt.u32.totalorder %s3581_s6, %s4557_s10 }
 0x290   : > { %p3583_p11 = pnand %p3582_p5, %p3766_p12 }
 0x291   : > { %p3588_p8 = por %p3587_p6, %p3586_p4 }
 0x292   : > { %p3584_p1 = pneg %p3583_p11 }
 0x293   : > { %p3590_p13 = por %p3589_p10, %p3588_p8 }
 0x295   : > { %p3591_p3 = pnand %p3590_p13, %p3584_p1 }
 0x297   : > { %3594 = shalt.err (!%p3591_p3)
}
 0x298   : > { %3346 = dma.vmem_to_hbm [thread:$0]  (%p3766_p12), %s4559_s27, 32, %s4557_s10, %s2569_s28  }
 0x299 PF: > { %s2610_s20 = sand.u32 1, %s3629_s12   ;;  %p4619_p7 = scmp.ne.s32.totalorder %s4609_s19, 0 }
 0x29a   : > { %p4620_p9 = scmp.ge.s32.totalorder %s3641_s15, 2  ;;  %s2611_s25 = scalar_lea.sflag [#allocation6], %s2610_s20 }
 0x29c   : > { %p3358_p2 = pnand %p4620_p9, %p4619_p7 }
 0x29e   : > { %3620 = dma.done.wait (!%p3358_p2), %s2611_s25, 4096  }
 0x29f   : > { %3622 = vsyncadd (!%p3358_p2), %s2611_s25, 4294963200  ;;  %s2620_s26 = scalar_lea.sflag [#allocation11], %s2610_s20 }
 0x2a0   : > { %3624 = dma.done.wait (!%p3358_p2), %s2620_s26, 32  }
 0x2a1   : > { %3626 = vsyncadd (!%p3358_p2), %s2620_s26, 4294967264  ;;  %p21_p12 = scmp.ge.s32.totalorder %s3731_s24, 4   ;;  %s4621_s12 = smov %s3633_s13 }
 0x2a2   : > { %s4622_s13 = smov %s3637_s14  ;;  %s4623_s14 = smov %s3762_s17 }
 0x2a3   : > { %s4624_s15 = smov %s3731_s24  ;;  %23 = sbr.rel (!%p21_p12) target bundleno = 8 (0x8), region = 97 }
 0x2aa   :  { %2625 = vsyncpa [#allocation5], 1 }
 0x2ab   :  { %2627 = vsyncpa [#allocation5 + $0x1], 1 }
 0x2ac   :  { %2628 = vsyncpa [#allocation8], 1 }
 0x2ad   :  { %2629 = vsyncpa [#allocation6], 1 }
 0x2ae   :  { %2631 = vsyncpa [#allocation6 + $0x1], 1 }
 0x2af   :  { %2632 = vsyncpa [#allocation11], 1 }
 0x2b0   :  { %2634 = vsyncpa [#allocation11 + $0x1], 1 }

</bundles_post_ra>
